<compile_context>
chip_gen: v6e
topology: v6e:2x2x1
jax: 0.10.0
libtpu: 0.0.40
codegen_flags: <defaults>
</compile_context>

<pallas_src>
import jax
import jax.numpy as jnp
from jax.experimental import pallas as pl
from jax.experimental.pallas import tpu as pltpu

HIDDEN = 32
FEAT_PAD = 32          # every per-type input feature dim is zero-padded to this
NUM_LAYERS = 2
NUM_GRAPHS = 2

NODE_TYPES = {"variable": 12, "value": 6, "operator": 5, "constraint": 8}
IN_DIMS = {"variable": 6, "value": 4, "operator": 3, "constraint": 5}
NT_ORDER = ("variable", "value", "operator", "constraint")
N_MAX = max(NODE_TYPES.values())   # 12

# Row offsets of each node type inside the packed X_all slab.
ROW_OFF = {}
_off = 0
for _nt in NT_ORDER:
    ROW_OFF[_nt] = _off
    _off += NODE_TYPES[_nt]
N_ALL = _off                       # 31
N_ALL_PAD = 32                     # slab padded to 32 rows

EDGE_TYPES = [
    ("variable", "connected_to", "value"),
    ("variable", "connected_to", "operator"),
    ("variable", "connected_to", "constraint"),
    ("constraint", "connected_to", "constraint"),
    ("value", "rev_connected_to", "variable"),
    ("operator", "rev_connected_to", "variable"),
    ("constraint", "rev_connected_to", "operator"),
]
N_ET = len(EDGE_TYPES)

# Edge types grouped by destination node type (HeteroConv aggr='sum').
DST_GROUPS = {nt: [t for t, et in enumerate(EDGE_TYPES) if et[2] == nt]
              for nt in NT_ORDER}

NEG_INF = jnp.float32(-1e30)


def _vmem():
    return pl.BlockSpec(memory_space=pltpu.MemorySpace.VMEM)


# ------------------------------ fused kernel ------------------------------- #
def sat_gnn_kernel(x_ref, adjb_ref, adjm_ref, ws_ref, vs_ref, vd_ref,
                   bsum_ref, pv_ref, pc_ref, lw_ref, lb_ref, out_ref,
                   x_scratch):
    # Packed node-feature slab (layer 0 input); kept in a VMEM scratch so the
    # next layer's slab can be rebuilt by static-offset stores (no concats).
    x_scratch[...] = x_ref[...]
    final = {}

    # Statically unrolled: 2 layers; matmuls batched across the 7 edge types.
    for layer in range(NUM_LAYERS):
        x_all = x_scratch[...]                                       # (32, 32)

        # One batched projection: column block t holds x @ W_src_t.
        h_all = jnp.dot(x_all, ws_ref[layer],
                        preferred_element_type=jnp.float32)          # (32, 224)
        # Attention scores, batched over edge types (att folded into input
        # space: a = x @ (W @ attᵀ)).
        a_src_all = jax.lax.dot_general(
            vs_ref[layer], x_all,
            dimension_numbers=(((1,), (1,)), ((), ())),
            preferred_element_type=jnp.float32)                      # (7, 32)
        a_dst_all = jnp.dot(x_all, vd_ref[layer],
                            preferred_element_type=jnp.float32)      # (32, 7)
        b_layer = bsum_ref[layer]                                    # (4, 32)

        last = layer == NUM_LAYERS - 1
        # Last layer: only 'variable' / 'constraint' feed the pooling head.
        dst_types = ("variable", "constraint") if last else NT_ORDER

        for dst in dst_types:
            d_idx = NT_ORDER.index(dst)
            nd, do = NODE_TYPES[dst], ROW_OFF[dst]
            agg = None
            for t in DST_GROUPS[dst]:
                src = EDGE_TYPES[t][0]
                ns, so = NODE_TYPES[src], ROW_OFF[src]

                h_src = h_all[so:so + ns, t * HIDDEN:(t + 1) * HIDDEN]  # (ns,H)
                a_src_row = a_src_all[t:t + 1, so:so + ns]              # (1,ns)
                a_dst_col = a_dst_all[do:do + nd, t:t + 1]              # (nd,1)

                e = a_dst_col + a_src_row                               # (nd,ns)
                e = jnp.where(e >= 0, e, 0.2 * e)                       # LeakyReLU(0.2)
                e = e + adjb_ref[t][:nd, :ns]                           # additive mask
                e_max = jnp.max(e, axis=-1, keepdims=True)
                # Multiply by 0/1 mask so zero-in-degree rows stay exactly 0
                # (exp(e - e_max) == 1 there since e == e_max == -1e30).
                p = adjm_ref[t][:nd, :ns] * jnp.exp(e - e_max)
                denom = jnp.maximum(jnp.sum(p, axis=-1, keepdims=True),
                                    jnp.float32(1e-16))
                alpha = p * pl.reciprocal(denom, approx=True)

                msg = jnp.dot(alpha, h_src,
                              preferred_element_type=jnp.float32)       # (nd,H)
                agg = msg if agg is None else agg + msg                 # hetero sum

            # Summed bias of all edge types hitting this dst type, then ReLU.
            # Dropout(p=0.3) is identity in eval mode.
            y = jnp.maximum(agg + b_layer[d_idx:d_idx + 1, :], 0.0)

            if last:
                final[dst] = y
            else:
                x_scratch[do:do + nd, :] = y     # rebuild next layer's slab

    # global_mean_pool (precomputed mean-pool matrices) + Linear(2H, 2).
    vp = jnp.dot(pv_ref[...], final["variable"],
                 preferred_element_type=jnp.float32)                    # (G, H)
    cp = jnp.dot(pc_ref[...], final["constraint"],
                 preferred_element_type=jnp.float32)                    # (G, H)
    # Linear on concat([vp, cp]) == vp @ W[:H] + cp @ W[H:] + b.
    out_ref[...] = (jnp.dot(vp, lw_ref[:HIDDEN, :], preferred_element_type=jnp.float32)
                    + jnp.dot(cp, lw_ref[HIDDEN:, :], preferred_element_type=jnp.float32)
                    + lb_ref[...])


# ------------------------------- host wrapper ------------------------------ #
def pack_x(x_dict):
    """Stack all node-type features into one zero-padded (32, 32) slab."""
    x_all = jnp.zeros((N_ALL_PAD, FEAT_PAD), jnp.float32)
    for nt in NT_ORDER:
        v = x_dict[nt]
        x_all = x_all.at[ROW_OFF[nt]:ROW_OFF[nt] + v.shape[0], :v.shape[1]].set(v)
    return x_all


def sat_gnn_forward(x_dict, adj_bias, adj_mask, pool_var, pool_con,
                    packed_params, lin_w, lin_b):
    ws, vs, vd, bsum = packed_params
    x_all = pack_x(x_dict)
    # TODO(synk): for batches of SAT instances add a leading "parallel" grid
    # axis (one instance per grid step) so both v7x TensorCores are used; a
    # single tiny instance stays grid-less.
    return pl.pallas_call(
        sat_gnn_kernel,
        out_shape=jax.ShapeDtypeStruct((pool_var.shape[0], 2), jnp.float32),
        in_specs=[_vmem()] * 11,
        out_specs=_vmem(),
        scratch_shapes=[pltpu.VMEM((N_ALL_PAD, FEAT_PAD), jnp.float32)],
    )(x_all, adj_bias, adj_mask, ws, vs, vd, bsum,
      pool_var, pool_con, lin_w, lin_b)


# ------------------------------ param packing ------------------------------ #
def pack_params(conv_params):
    """Pack per-(layer, edge-type) params into batched, zero-padded slabs.

    Returns:
      ws:   (L, FEAT_PAD, N_ET*HIDDEN)  concatenated source projections
      vs:   (L, N_ET, FEAT_PAD)         folded att_src vectors (row per edge type)
      vd:   (L, FEAT_PAD, N_ET)         folded att_dst vectors (col per edge type)
      bsum: (L, 4, HIDDEN)              HeteroConv-summed bias per dst node type
    """
    ws_l, vs_l, vd_l, bs_l = [], [], [], []
    for layer_params in conv_params:
        w_blocks, vs_rows, vd_cols = [], [], []
        bsum = {nt: jnp.zeros((HIDDEN,), jnp.float32) for nt in NT_ORDER}
        for et in EDGE_TYPES:
            _, _, dst = et
            p = layer_params[et]
            w_src, w_dst = p["w_src"], p["w_dst"]
            f_src, f_dst = w_src.shape[0], w_dst.shape[0]
            w_blocks.append(
                jnp.zeros((FEAT_PAD, HIDDEN), jnp.float32).at[:f_src].set(w_src))
            # Fold attention vectors into the input space: a = x @ (W @ attᵀ).
            v_src = (w_src @ p["att_src"].T)[:, 0]     # (f_src,)
            v_dst = (w_dst @ p["att_dst"].T)[:, 0]     # (f_dst,)
            vs_rows.append(jnp.zeros((FEAT_PAD,), jnp.float32).at[:f_src].set(v_src))
            vd_cols.append(jnp.zeros((FEAT_PAD,), jnp.float32).at[:f_dst].set(v_dst))
            bsum[dst] = bsum[dst] + p["bias"][0]
        ws_l.append(jnp.concatenate(w_blocks, axis=1))            # (32, 224)
        vs_l.append(jnp.stack(vs_rows, axis=0))                   # (7, 32)
        vd_l.append(jnp.stack(vd_cols, axis=1))                   # (32, 7)
        bs_l.append(jnp.stack([bsum[nt] for nt in NT_ORDER]))     # (4, 32)
    return (jnp.stack(ws_l), jnp.stack(vs_l), jnp.stack(vd_l), jnp.stack(bs_l))


def pack_adj(adj_dict):
    """Pack adjacency into a 0/1 mask slab and an additive (0 / -1e30) slab."""
    mask = jnp.zeros((N_ET, N_MAX, N_MAX), jnp.float32)
    for t, et in enumerate(EDGE_TYPES):
        a = adj_dict[et]
        mask = mask.at[t, :a.shape[0], :a.shape[1]].set(a)
    bias = jnp.where(mask > 0, jnp.float32(0.0), NEG_INF)
    return bias, mask


# ------------------------------- param setup ------------------------------- #
def init_params(key):
    conv_params = []
    for layer in range(NUM_LAYERS):
        layer_params = {}
        for et in EDGE_TYPES:
            src, _, dst = et
            f_src = IN_DIMS[src] if layer == 0 else HIDDEN
            f_dst = IN_DIMS[dst] if layer == 0 else HIDDEN
            key, k1, k2, k3, k4 = jax.random.split(key, 5)
            layer_params[et] = {
                "w_src": jax.random.normal(k1, (f_src, HIDDEN), jnp.float32) * 0.2,
                "w_dst": jax.random.normal(k2, (f_dst, HIDDEN), jnp.float32) * 0.2,
                "att_src": jax.random.normal(k3, (1, HIDDEN), jnp.float32) * 0.2,
                "att_dst": jax.random.normal(k4, (1, HIDDEN), jnp.float32) * 0.2,
                "bias": jnp.zeros((1, HIDDEN), jnp.float32),
            }
        conv_params.append(layer_params)
    key, kw, kb = jax.random.split(key, 3)
    lin_w = jax.random.normal(kw, (2 * HIDDEN, 2), jnp.float32) * 0.1
    lin_b = jax.random.normal(kb, (1, 2), jnp.float32) * 0.1
    return conv_params, lin_w, lin_b


def mean_pool_matrix(batch, num_graphs):
    onehot = (batch[None, :] == jnp.arange(num_graphs)[:, None]).astype(jnp.float32)
    counts = jnp.maximum(onehot.sum(axis=1, keepdims=True), 1.0)
    return onehot / counts


# ------------------------ pure-JAX reference (check) ----------------------- #
def reference_forward(x_dict, adj_dict, pool_var, pool_con, conv_params,
                      lin_w, lin_b):
    x = dict(x_dict)
    for layer_params in conv_params:
        agg = {}
        for et in EDGE_TYPES:
            src, _, dst = et
            p = layer_params[et]
            h_src = x[src] @ p["w_src"]
            h_dst = x[dst] @ p["w_dst"]
            a_src = (h_src * p["att_src"]).sum(-1)
            a_dst = (h_dst * p["att_dst"]).sum(-1)
            e = a_dst[:, None] + a_src[None, :]
            e = jnp.where(e >= 0, e, 0.2 * e)
            adj = adj_dict[et]
            e_m = jnp.where(adj > 0, e, -1e30)
            e_max = jnp.max(e_m, axis=-1, keepdims=True)
            pm = jnp.where(adj > 0, jnp.exp(e_m - e_max), 0.0)
            denom = jnp.maximum(pm.sum(-1, keepdims=True), 1e-16)
            y = (pm / denom) @ h_src + p["bias"]
            agg[dst] = y if dst not in agg else agg[dst] + y
        x = {k: jax.nn.relu(v) for k, v in agg.items()}
    vp = pool_var @ x["variable"]
    cp = pool_con @ x["constraint"]
    return jnp.concatenate([vp, cp], axis=1) @ lin_w + lin_b


if __name__ == "__main__":
    key = jax.random.PRNGKey(0)

    # Node features per type.
    x_dict = {}
    for nt, n in NODE_TYPES.items():
        key, sub = jax.random.split(key)
        x_dict[nt] = jax.random.normal(sub, (n, IN_DIMS[nt]), jnp.float32)

    # Dense adjacency per edge type (adj[dst, src] = 1 iff edge src -> dst).
    adj_dict = {}
    for et in EDGE_TYPES:
        src, _, dst = et
        key, sub = jax.random.split(key)
        adj_dict[et] = jax.random.bernoulli(
            sub, 0.4, (NODE_TYPES[dst], NODE_TYPES[src])).astype(jnp.float32)

    # batch_dict -> mean-pooling matrices.
    batch_var = jnp.array([0] * 6 + [1] * 6, jnp.int32)
    batch_con = jnp.array([0] * 4 + [1] * 4, jnp.int32)
    pool_var = mean_pool_matrix(batch_var, NUM_GRAPHS)
    pool_con = mean_pool_matrix(batch_con, NUM_GRAPHS)

    key, pkey = jax.random.split(key)
    conv_params, lin_w, lin_b = init_params(pkey)

    # Pack params / adjacency once (host side) into a handful of dense slabs.
    packed_params = pack_params(conv_params)
    adj_bias, adj_mask = pack_adj(adj_dict)

    out = sat_gnn_forward(x_dict, adj_bias, adj_mask, pool_var, pool_con,
                          packed_params, lin_w, lin_b)
    out = jax.block_until_ready(out)

    ref = reference_forward(x_dict, adj_dict, pool_var, pool_con,
                            conv_params, lin_w, lin_b)
    ref = jax.block_until_ready(ref)

    assert out.shape == (NUM_GRAPHS, 2) and bool(jnp.all(jnp.isfinite(out)))
    # Slightly relaxed vs 1e-3: approx-rcp softmax normalization is the only
    # numerics difference vs the exact reference.
    assert jnp.allclose(out, ref, atol=2e-3, rtol=2e-3)
    print("KERNEL_OK")
</pallas_src>

<mosaic_0001>
module attributes {stable_mosaic.version = 11 : i64} {
  func.func @sat_gnn_kernel(%arg0: memref<32x32xf32, #tpu.memory_space<vmem>>, %arg1: memref<7x12x12xf32, #tpu.memory_space<vmem>>, %arg2: memref<7x12x12xf32, #tpu.memory_space<vmem>>, %arg3: memref<2x32x224xf32, #tpu.memory_space<vmem>>, %arg4: memref<2x7x32xf32, #tpu.memory_space<vmem>>, %arg5: memref<2x32x7xf32, #tpu.memory_space<vmem>>, %arg6: memref<2x4x32xf32, #tpu.memory_space<vmem>>, %arg7: memref<2x12xf32, #tpu.memory_space<vmem>>, %arg8: memref<2x8xf32, #tpu.memory_space<vmem>>, %arg9: memref<64x2xf32, #tpu.memory_space<vmem>>, %arg10: memref<1x2xf32, #tpu.memory_space<vmem>>, %arg11: memref<2x2xf32, #tpu.memory_space<vmem>>, %arg12: memref<32x32xf32, #tpu.memory_space<vmem>>) attributes {dimension_semantics = [], scalar_prefetch = 0 : i64, scratch_operands = 1 : i64, tpu.core_type = #tpu.core_type<tc>} {
    %c0 = arith.constant 0 : index
    %c0_0 = arith.constant 0 : index
    %0 = vector.load %arg0[%c0, %c0_0] : memref<32x32xf32, #tpu.memory_space<vmem>>, vector<32x32xf32>
    %c0_1 = arith.constant 0 : index
    %c0_2 = arith.constant 0 : index
    %1 = vector.load %arg12[%c0_1, %c0_2] : memref<32x32xf32, #tpu.memory_space<vmem>>, vector<32x32xf32>
    tpu.vector_store %arg12[%c0_1, %c0_2], %0 {strides = array<i32>} : memref<32x32xf32, #tpu.memory_space<vmem>>, vector<32x32xf32>,
    %c0_3 = arith.constant 0 : index
    %c0_4 = arith.constant 0 : index
    %2 = vector.load %arg12[%c0_3, %c0_4] : memref<32x32xf32, #tpu.memory_space<vmem>>, vector<32x32xf32>
    %c0_5 = arith.constant 0 : index
    %c0_6 = arith.constant 0 : index
    %c0_7 = arith.constant 0 : index
    %3 = vector.load %arg3[%c0_5, %c0_6, %c0_7] : memref<2x32x224xf32, #tpu.memory_space<vmem>>, vector<1x32x224xf32>
    %4 = vector.shape_cast %3 : vector<1x32x224xf32> to vector<32x224xf32>
    %cst = arith.constant dense<0.000000e+00> : vector<32x224xf32>
    %5 = tpu.matmul %2, %4, %cst {dimension_numbers = #tpu.dot_dimension_numbers<[1], [0], [0], [1], [0, 0, 1, 1], [], []>} : vector<32x32xf32>, vector<32x224xf32>, vector<32x224xf32> -> vector<32x224xf32>
    %c0_8 = arith.constant 0 : index
    %c0_9 = arith.constant 0 : index
    %c0_10 = arith.constant 0 : index
    %6 = vector.load %arg4[%c0_8, %c0_9, %c0_10] : memref<2x7x32xf32, #tpu.memory_space<vmem>>, vector<1x7x32xf32>
    %7 = vector.shape_cast %6 : vector<1x7x32xf32> to vector<7x32xf32>
    %cst_11 = arith.constant dense<0.000000e+00> : vector<7x32xf32>
    %8 = tpu.matmul %7, %2, %cst_11 {dimension_numbers = #tpu.dot_dimension_numbers<[1], [1], [0], [0], [0, 0, 1, 0], [], []>} : vector<7x32xf32>, vector<32x32xf32>, vector<7x32xf32> -> vector<7x32xf32>
    %c0_12 = arith.constant 0 : index
    %c0_13 = arith.constant 0 : index
    %c0_14 = arith.constant 0 : index
    %9 = vector.load %arg5[%c0_12, %c0_13, %c0_14] : memref<2x32x7xf32, #tpu.memory_space<vmem>>, vector<1x32x7xf32>
    %10 = vector.shape_cast %9 : vector<1x32x7xf32> to vector<32x7xf32>
    %cst_15 = arith.constant dense<0.000000e+00> : vector<32x7xf32>
    %11 = tpu.matmul %2, %10, %cst_15 {dimension_numbers = #tpu.dot_dimension_numbers<[1], [0], [0], [1], [0, 0, 1, 1], [], []>} : vector<32x32xf32>, vector<32x7xf32>, vector<32x7xf32> -> vector<32x7xf32>
    %c0_16 = arith.constant 0 : index
    %c0_17 = arith.constant 0 : index
    %c0_18 = arith.constant 0 : index
    %12 = vector.load %arg6[%c0_16, %c0_17, %c0_18] : memref<2x4x32xf32, #tpu.memory_space<vmem>>, vector<1x4x32xf32>
    %13 = vector.shape_cast %12 : vector<1x4x32xf32> to vector<4x32xf32>
    %14 = vector.extract_strided_slice %5 {offsets = [12, 128], sizes = [6, 32], strides = [1, 1]} : vector<32x224xf32> to vector<6x32xf32>
    %15 = vector.extract_strided_slice %8 {offsets = [4, 12], sizes = [1, 6], strides = [1, 1]} : vector<7x32xf32> to vector<1x6xf32>
    %16 = vector.extract_strided_slice %11 {offsets = [0, 4], sizes = [12, 1], strides = [1, 1]} : vector<32x7xf32> to vector<12x1xf32>
    %17 = vector.broadcast %16 : vector<12x1xf32> to vector<12x6xf32>
    %18 = vector.broadcast %15 : vector<1x6xf32> to vector<12x6xf32>
    %19 = arith.addf %17, %18 : vector<12x6xf32>
    %cst_19 = arith.constant 0.000000e+00 : f32
    %20 = vector.broadcast %cst_19 : f32 to vector<12x6xf32>
    %21 = arith.cmpf oge, %19, %20 : vector<12x6xf32>
    %cst_20 = arith.constant 2.000000e-01 : f32
    %22 = vector.broadcast %cst_20 : f32 to vector<12x6xf32>
    %23 = arith.mulf %22, %19 : vector<12x6xf32>
    %24 = arith.select %21, %19, %23 : vector<12x6xi1>, vector<12x6xf32>
    %c4 = arith.constant 4 : index
    %c0_21 = arith.constant 0 : index
    %c0_22 = arith.constant 0 : index
    %25 = vector.load %arg1[%c4, %c0_21, %c0_22] : memref<7x12x12xf32, #tpu.memory_space<vmem>>, vector<1x12x12xf32>
    %26 = vector.shape_cast %25 : vector<1x12x12xf32> to vector<12x12xf32>
    %27 = vector.extract_strided_slice %26 {offsets = [0, 0], sizes = [12, 6], strides = [1, 1]} : vector<12x12xf32> to vector<12x6xf32>
    %28 = arith.addf %24, %27 : vector<12x6xf32>
    %cst_23 = arith.constant dense<0xFF800000> : vector<12xf32>
    %29 = vector.multi_reduction <maximumf>, %28, %cst_23 [1] : vector<12x6xf32> to vector<12xf32>
    %30 = vector.shape_cast %29 : vector<12xf32> to vector<12x1xf32>
    %c4_24 = arith.constant 4 : index
    %c0_25 = arith.constant 0 : index
    %c0_26 = arith.constant 0 : index
    %31 = vector.load %arg2[%c4_24, %c0_25, %c0_26] : memref<7x12x12xf32, #tpu.memory_space<vmem>>, vector<1x12x12xf32>
    %32 = vector.shape_cast %31 : vector<1x12x12xf32> to vector<12x12xf32>
    %33 = vector.extract_strided_slice %32 {offsets = [0, 0], sizes = [12, 6], strides = [1, 1]} : vector<12x12xf32> to vector<12x6xf32>
    %34 = vector.broadcast %30 : vector<12x1xf32> to vector<12x6xf32>
    %35 = arith.subf %28, %34 : vector<12x6xf32>
    %36 = math.exp %35 : vector<12x6xf32>
    %37 = arith.mulf %33, %36 : vector<12x6xf32>
    %cst_27 = arith.constant dense<0.000000e+00> : vector<12xf32>
    %38 = vector.multi_reduction <add>, %37, %cst_27 [1] : vector<12x6xf32> to vector<12xf32>
    %39 = vector.shape_cast %38 : vector<12xf32> to vector<12x1xf32>
    %cst_28 = arith.constant 1.000000e-16 : f32
    %40 = vector.broadcast %cst_28 : f32 to vector<12x1xf32>
    %41 = arith.maximumf %39, %40 : vector<12x1xf32>
    %42 = tpu.reciprocal %41 {approx = true} : vector<12x1xf32> -> vector<12x1xf32>
    %43 = vector.broadcast %42 : vector<12x1xf32> to vector<12x6xf32>
    %44 = arith.mulf %37, %43 : vector<12x6xf32>
    %cst_29 = arith.constant dense<0.000000e+00> : vector<12x32xf32>
    %45 = tpu.matmul %44, %14, %cst_29 {dimension_numbers = #tpu.dot_dimension_numbers<[1], [0], [0], [1], [0, 0, 1, 1], [], []>} : vector<12x6xf32>, vector<6x32xf32>, vector<12x32xf32> -> vector<12x32xf32>
    %46 = vector.extract_strided_slice %5 {offsets = [18, 160], sizes = [5, 32], strides = [1, 1]} : vector<32x224xf32> to vector<5x32xf32>
    %47 = vector.extract_strided_slice %8 {offsets = [5, 18], sizes = [1, 5], strides = [1, 1]} : vector<7x32xf32> to vector<1x5xf32>
    %48 = vector.extract_strided_slice %11 {offsets = [0, 5], sizes = [12, 1], strides = [1, 1]} : vector<32x7xf32> to vector<12x1xf32>
    %49 = vector.broadcast %48 : vector<12x1xf32> to vector<12x5xf32>
    %50 = vector.broadcast %47 : vector<1x5xf32> to vector<12x5xf32>
    %51 = arith.addf %49, %50 : vector<12x5xf32>
    %cst_30 = arith.constant 0.000000e+00 : f32
    %52 = vector.broadcast %cst_30 : f32 to vector<12x5xf32>
    %53 = arith.cmpf oge, %51, %52 : vector<12x5xf32>
    %cst_31 = arith.constant 2.000000e-01 : f32
    %54 = vector.broadcast %cst_31 : f32 to vector<12x5xf32>
    %55 = arith.mulf %54, %51 : vector<12x5xf32>
    %56 = arith.select %53, %51, %55 : vector<12x5xi1>, vector<12x5xf32>
    %c5 = arith.constant 5 : index
    %c0_32 = arith.constant 0 : index
    %c0_33 = arith.constant 0 : index
    %57 = vector.load %arg1[%c5, %c0_32, %c0_33] : memref<7x12x12xf32, #tpu.memory_space<vmem>>, vector<1x12x12xf32>
    %58 = vector.shape_cast %57 : vector<1x12x12xf32> to vector<12x12xf32>
    %59 = vector.extract_strided_slice %58 {offsets = [0, 0], sizes = [12, 5], strides = [1, 1]} : vector<12x12xf32> to vector<12x5xf32>
    %60 = arith.addf %56, %59 : vector<12x5xf32>
    %cst_34 = arith.constant dense<0xFF800000> : vector<12xf32>
    %61 = vector.multi_reduction <maximumf>, %60, %cst_34 [1] : vector<12x5xf32> to vector<12xf32>
    %62 = vector.shape_cast %61 : vector<12xf32> to vector<12x1xf32>
    %c5_35 = arith.constant 5 : index
    %c0_36 = arith.constant 0 : index
    %c0_37 = arith.constant 0 : index
    %63 = vector.load %arg2[%c5_35, %c0_36, %c0_37] : memref<7x12x12xf32, #tpu.memory_space<vmem>>, vector<1x12x12xf32>
    %64 = vector.shape_cast %63 : vector<1x12x12xf32> to vector<12x12xf32>
    %65 = vector.extract_strided_slice %64 {offsets = [0, 0], sizes = [12, 5], strides = [1, 1]} : vector<12x12xf32> to vector<12x5xf32>
    %66 = vector.broadcast %62 : vector<12x1xf32> to vector<12x5xf32>
    %67 = arith.subf %60, %66 : vector<12x5xf32>
    %68 = math.exp %67 : vector<12x5xf32>
    %69 = arith.mulf %65, %68 : vector<12x5xf32>
    %cst_38 = arith.constant dense<0.000000e+00> : vector<12xf32>
    %70 = vector.multi_reduction <add>, %69, %cst_38 [1] : vector<12x5xf32> to vector<12xf32>
    %71 = vector.shape_cast %70 : vector<12xf32> to vector<12x1xf32>
    %cst_39 = arith.constant 1.000000e-16 : f32
    %72 = vector.broadcast %cst_39 : f32 to vector<12x1xf32>
    %73 = arith.maximumf %71, %72 : vector<12x1xf32>
    %74 = tpu.reciprocal %73 {approx = true} : vector<12x1xf32> -> vector<12x1xf32>
    %75 = vector.broadcast %74 : vector<12x1xf32> to vector<12x5xf32>
    %76 = arith.mulf %69, %75 : vector<12x5xf32>
    %cst_40 = arith.constant dense<0.000000e+00> : vector<12x32xf32>
    %77 = tpu.matmul %76, %46, %cst_40 {dimension_numbers = #tpu.dot_dimension_numbers<[1], [0], [0], [1], [0, 0, 1, 1], [], []>} : vector<12x5xf32>, vector<5x32xf32>, vector<12x32xf32> -> vector<12x32xf32>
    %78 = arith.addf %45, %77 : vector<12x32xf32>
    %79 = vector.extract_strided_slice %13 {offsets = [0, 0], sizes = [1, 32], strides = [1, 1]} : vector<4x32xf32> to vector<1x32xf32>
    %80 = vector.broadcast %79 : vector<1x32xf32> to vector<12x32xf32>
    %81 = arith.addf %78, %80 : vector<12x32xf32>
    %cst_41 = arith.constant 0.000000e+00 : f32
    %82 = vector.broadcast %cst_41 : f32 to vector<12x32xf32>
    %83 = arith.maximumf %81, %82 : vector<12x32xf32>
    %c0_42 = arith.constant 0 : index
    %c0_43 = arith.constant 0 : index
    %84 = vector.load %arg12[%c0_42, %c0_43] : memref<32x32xf32, #tpu.memory_space<vmem>>, vector<12x32xf32>
    tpu.vector_store %arg12[%c0_42, %c0_43], %83 {strides = array<i32>} : memref<32x32xf32, #tpu.memory_space<vmem>>, vector<12x32xf32>,
    %85 = vector.extract_strided_slice %5 {offsets = [0, 0], sizes = [12, 32], strides = [1, 1]} : vector<32x224xf32> to vector<12x32xf32>
    %86 = vector.extract_strided_slice %8 {offsets = [0, 0], sizes = [1, 12], strides = [1, 1]} : vector<7x32xf32> to vector<1x12xf32>
    %87 = vector.extract_strided_slice %11 {offsets = [12, 0], sizes = [6, 1], strides = [1, 1]} : vector<32x7xf32> to vector<6x1xf32>
    %88 = vector.broadcast %87 : vector<6x1xf32> to vector<6x12xf32>
    %89 = vector.broadcast %86 : vector<1x12xf32> to vector<6x12xf32>
    %90 = arith.addf %88, %89 : vector<6x12xf32>
    %cst_44 = arith.constant 0.000000e+00 : f32
    %91 = vector.broadcast %cst_44 : f32 to vector<6x12xf32>
    %92 = arith.cmpf oge, %90, %91 : vector<6x12xf32>
    %cst_45 = arith.constant 2.000000e-01 : f32
    %93 = vector.broadcast %cst_45 : f32 to vector<6x12xf32>
    %94 = arith.mulf %93, %90 : vector<6x12xf32>
    %95 = arith.select %92, %90, %94 : vector<6x12xi1>, vector<6x12xf32>
    %c0_46 = arith.constant 0 : index
    %c0_47 = arith.constant 0 : index
    %c0_48 = arith.constant 0 : index
    %96 = vector.load %arg1[%c0_46, %c0_47, %c0_48] : memref<7x12x12xf32, #tpu.memory_space<vmem>>, vector<1x12x12xf32>
    %97 = vector.shape_cast %96 : vector<1x12x12xf32> to vector<12x12xf32>
    %98 = vector.extract_strided_slice %97 {offsets = [0, 0], sizes = [6, 12], strides = [1, 1]} : vector<12x12xf32> to vector<6x12xf32>
    %99 = arith.addf %95, %98 : vector<6x12xf32>
    %cst_49 = arith.constant dense<0xFF800000> : vector<6xf32>
    %100 = vector.multi_reduction <maximumf>, %99, %cst_49 [1] : vector<6x12xf32> to vector<6xf32>
    %101 = vector.shape_cast %100 : vector<6xf32> to vector<6x1xf32>
    %c0_50 = arith.constant 0 : index
    %c0_51 = arith.constant 0 : index
    %c0_52 = arith.constant 0 : index
    %102 = vector.load %arg2[%c0_50, %c0_51, %c0_52] : memref<7x12x12xf32, #tpu.memory_space<vmem>>, vector<1x12x12xf32>
    %103 = vector.shape_cast %102 : vector<1x12x12xf32> to vector<12x12xf32>
    %104 = vector.extract_strided_slice %103 {offsets = [0, 0], sizes = [6, 12], strides = [1, 1]} : vector<12x12xf32> to vector<6x12xf32>
    %105 = vector.broadcast %101 : vector<6x1xf32> to vector<6x12xf32>
    %106 = arith.subf %99, %105 : vector<6x12xf32>
    %107 = math.exp %106 : vector<6x12xf32>
    %108 = arith.mulf %104, %107 : vector<6x12xf32>
    %cst_53 = arith.constant dense<0.000000e+00> : vector<6xf32>
    %109 = vector.multi_reduction <add>, %108, %cst_53 [1] : vector<6x12xf32> to vector<6xf32>
    %110 = vector.shape_cast %109 : vector<6xf32> to vector<6x1xf32>
    %cst_54 = arith.constant 1.000000e-16 : f32
    %111 = vector.broadcast %cst_54 : f32 to vector<6x1xf32>
    %112 = arith.maximumf %110, %111 : vector<6x1xf32>
    %113 = tpu.reciprocal %112 {approx = true} : vector<6x1xf32> -> vector<6x1xf32>
    %114 = vector.broadcast %113 : vector<6x1xf32> to vector<6x12xf32>
    %115 = arith.mulf %108, %114 : vector<6x12xf32>
    %cst_55 = arith.constant dense<0.000000e+00> : vector<6x32xf32>
    %116 = tpu.matmul %115, %85, %cst_55 {dimension_numbers = #tpu.dot_dimension_numbers<[1], [0], [0], [1], [0, 0, 1, 1], [], []>} : vector<6x12xf32>, vector<12x32xf32>, vector<6x32xf32> -> vector<6x32xf32>
    %117 = vector.extract_strided_slice %13 {offsets = [1, 0], sizes = [1, 32], strides = [1, 1]} : vector<4x32xf32> to vector<1x32xf32>
    %118 = vector.broadcast %117 : vector<1x32xf32> to vector<6x32xf32>
    %119 = arith.addf %116, %118 : vector<6x32xf32>
    %cst_56 = arith.constant 0.000000e+00 : f32
    %120 = vector.broadcast %cst_56 : f32 to vector<6x32xf32>
    %121 = arith.maximumf %119, %120 : vector<6x32xf32>
    %c12 = arith.constant 12 : index
    %c0_57 = arith.constant 0 : index
    %122 = vector.load %arg12[%c12, %c0_57] : memref<32x32xf32, #tpu.memory_space<vmem>>, vector<6x32xf32>
    tpu.vector_store %arg12[%c12, %c0_57], %121 {strides = array<i32>} : memref<32x32xf32, #tpu.memory_space<vmem>>, vector<6x32xf32>,
    %123 = vector.extract_strided_slice %5 {offsets = [0, 32], sizes = [12, 32], strides = [1, 1]} : vector<32x224xf32> to vector<12x32xf32>
    %124 = vector.extract_strided_slice %8 {offsets = [1, 0], sizes = [1, 12], strides = [1, 1]} : vector<7x32xf32> to vector<1x12xf32>
    %125 = vector.extract_strided_slice %11 {offsets = [18, 1], sizes = [5, 1], strides = [1, 1]} : vector<32x7xf32> to vector<5x1xf32>
    %126 = vector.broadcast %125 : vector<5x1xf32> to vector<5x12xf32>
    %127 = vector.broadcast %124 : vector<1x12xf32> to vector<5x12xf32>
    %128 = arith.addf %126, %127 : vector<5x12xf32>
    %cst_58 = arith.constant 0.000000e+00 : f32
    %129 = vector.broadcast %cst_58 : f32 to vector<5x12xf32>
    %130 = arith.cmpf oge, %128, %129 : vector<5x12xf32>
    %cst_59 = arith.constant 2.000000e-01 : f32
    %131 = vector.broadcast %cst_59 : f32 to vector<5x12xf32>
    %132 = arith.mulf %131, %128 : vector<5x12xf32>
    %133 = arith.select %130, %128, %132 : vector<5x12xi1>, vector<5x12xf32>
    %c1 = arith.constant 1 : index
    %c0_60 = arith.constant 0 : index
    %c0_61 = arith.constant 0 : index
    %134 = vector.load %arg1[%c1, %c0_60, %c0_61] : memref<7x12x12xf32, #tpu.memory_space<vmem>>, vector<1x12x12xf32>
    %135 = vector.shape_cast %134 : vector<1x12x12xf32> to vector<12x12xf32>
    %136 = vector.extract_strided_slice %135 {offsets = [0, 0], sizes = [5, 12], strides = [1, 1]} : vector<12x12xf32> to vector<5x12xf32>
    %137 = arith.addf %133, %136 : vector<5x12xf32>
    %cst_62 = arith.constant dense<0xFF800000> : vector<5xf32>
    %138 = vector.multi_reduction <maximumf>, %137, %cst_62 [1] : vector<5x12xf32> to vector<5xf32>
    %139 = vector.shape_cast %138 : vector<5xf32> to vector<5x1xf32>
    %c1_63 = arith.constant 1 : index
    %c0_64 = arith.constant 0 : index
    %c0_65 = arith.constant 0 : index
    %140 = vector.load %arg2[%c1_63, %c0_64, %c0_65] : memref<7x12x12xf32, #tpu.memory_space<vmem>>, vector<1x12x12xf32>
    %141 = vector.shape_cast %140 : vector<1x12x12xf32> to vector<12x12xf32>
    %142 = vector.extract_strided_slice %141 {offsets = [0, 0], sizes = [5, 12], strides = [1, 1]} : vector<12x12xf32> to vector<5x12xf32>
    %143 = vector.broadcast %139 : vector<5x1xf32> to vector<5x12xf32>
    %144 = arith.subf %137, %143 : vector<5x12xf32>
    %145 = math.exp %144 : vector<5x12xf32>
    %146 = arith.mulf %142, %145 : vector<5x12xf32>
    %cst_66 = arith.constant dense<0.000000e+00> : vector<5xf32>
    %147 = vector.multi_reduction <add>, %146, %cst_66 [1] : vector<5x12xf32> to vector<5xf32>
    %148 = vector.shape_cast %147 : vector<5xf32> to vector<5x1xf32>
    %cst_67 = arith.constant 1.000000e-16 : f32
    %149 = vector.broadcast %cst_67 : f32 to vector<5x1xf32>
    %150 = arith.maximumf %148, %149 : vector<5x1xf32>
    %151 = tpu.reciprocal %150 {approx = true} : vector<5x1xf32> -> vector<5x1xf32>
    %152 = vector.broadcast %151 : vector<5x1xf32> to vector<5x12xf32>
    %153 = arith.mulf %146, %152 : vector<5x12xf32>
    %cst_68 = arith.constant dense<0.000000e+00> : vector<5x32xf32>
    %154 = tpu.matmul %153, %123, %cst_68 {dimension_numbers = #tpu.dot_dimension_numbers<[1], [0], [0], [1], [0, 0, 1, 1], [], []>} : vector<5x12xf32>, vector<12x32xf32>, vector<5x32xf32> -> vector<5x32xf32>
    %155 = vector.extract_strided_slice %5 {offsets = [23, 192], sizes = [8, 32], strides = [1, 1]} : vector<32x224xf32> to vector<8x32xf32>
    %156 = vector.extract_strided_slice %8 {offsets = [6, 23], sizes = [1, 8], strides = [1, 1]} : vector<7x32xf32> to vector<1x8xf32>
    %157 = vector.extract_strided_slice %11 {offsets = [18, 6], sizes = [5, 1], strides = [1, 1]} : vector<32x7xf32> to vector<5x1xf32>
    %158 = vector.broadcast %157 : vector<5x1xf32> to vector<5x8xf32>
    %159 = vector.broadcast %156 : vector<1x8xf32> to vector<5x8xf32>
    %160 = arith.addf %158, %159 : vector<5x8xf32>
    %cst_69 = arith.constant 0.000000e+00 : f32
    %161 = vector.broadcast %cst_69 : f32 to vector<5x8xf32>
    %162 = arith.cmpf oge, %160, %161 : vector<5x8xf32>
    %cst_70 = arith.constant 2.000000e-01 : f32
    %163 = vector.broadcast %cst_70 : f32 to vector<5x8xf32>
    %164 = arith.mulf %163, %160 : vector<5x8xf32>
    %165 = arith.select %162, %160, %164 : vector<5x8xi1>, vector<5x8xf32>
    %c6 = arith.constant 6 : index
    %c0_71 = arith.constant 0 : index
    %c0_72 = arith.constant 0 : index
    %166 = vector.load %arg1[%c6, %c0_71, %c0_72] : memref<7x12x12xf32, #tpu.memory_space<vmem>>, vector<1x12x12xf32>
    %167 = vector.shape_cast %166 : vector<1x12x12xf32> to vector<12x12xf32>
    %168 = vector.extract_strided_slice %167 {offsets = [0, 0], sizes = [5, 8], strides = [1, 1]} : vector<12x12xf32> to vector<5x8xf32>
    %169 = arith.addf %165, %168 : vector<5x8xf32>
    %cst_73 = arith.constant dense<0xFF800000> : vector<5xf32>
    %170 = vector.multi_reduction <maximumf>, %169, %cst_73 [1] : vector<5x8xf32> to vector<5xf32>
    %171 = vector.shape_cast %170 : vector<5xf32> to vector<5x1xf32>
    %c6_74 = arith.constant 6 : index
    %c0_75 = arith.constant 0 : index
    %c0_76 = arith.constant 0 : index
    %172 = vector.load %arg2[%c6_74, %c0_75, %c0_76] : memref<7x12x12xf32, #tpu.memory_space<vmem>>, vector<1x12x12xf32>
    %173 = vector.shape_cast %172 : vector<1x12x12xf32> to vector<12x12xf32>
    %174 = vector.extract_strided_slice %173 {offsets = [0, 0], sizes = [5, 8], strides = [1, 1]} : vector<12x12xf32> to vector<5x8xf32>
    %175 = vector.broadcast %171 : vector<5x1xf32> to vector<5x8xf32>
    %176 = arith.subf %169, %175 : vector<5x8xf32>
    %177 = math.exp %176 : vector<5x8xf32>
    %178 = arith.mulf %174, %177 : vector<5x8xf32>
    %cst_77 = arith.constant dense<0.000000e+00> : vector<5xf32>
    %179 = vector.multi_reduction <add>, %178, %cst_77 [1] : vector<5x8xf32> to vector<5xf32>
    %180 = vector.shape_cast %179 : vector<5xf32> to vector<5x1xf32>
    %cst_78 = arith.constant 1.000000e-16 : f32
    %181 = vector.broadcast %cst_78 : f32 to vector<5x1xf32>
    %182 = arith.maximumf %180, %181 : vector<5x1xf32>
    %183 = tpu.reciprocal %182 {approx = true} : vector<5x1xf32> -> vector<5x1xf32>
    %184 = vector.broadcast %183 : vector<5x1xf32> to vector<5x8xf32>
    %185 = arith.mulf %178, %184 : vector<5x8xf32>
    %cst_79 = arith.constant dense<0.000000e+00> : vector<5x32xf32>
    %186 = tpu.matmul %185, %155, %cst_79 {dimension_numbers = #tpu.dot_dimension_numbers<[1], [0], [0], [1], [0, 0, 1, 1], [], []>} : vector<5x8xf32>, vector<8x32xf32>, vector<5x32xf32> -> vector<5x32xf32>
    %187 = arith.addf %154, %186 : vector<5x32xf32>
    %188 = vector.extract_strided_slice %13 {offsets = [2, 0], sizes = [1, 32], strides = [1, 1]} : vector<4x32xf32> to vector<1x32xf32>
    %189 = vector.broadcast %188 : vector<1x32xf32> to vector<5x32xf32>
    %190 = arith.addf %187, %189 : vector<5x32xf32>
    %cst_80 = arith.constant 0.000000e+00 : f32
    %191 = vector.broadcast %cst_80 : f32 to vector<5x32xf32>
    %192 = arith.maximumf %190, %191 : vector<5x32xf32>
    %c18 = arith.constant 18 : index
    %c0_81 = arith.constant 0 : index
    %193 = vector.load %arg12[%c18, %c0_81] : memref<32x32xf32, #tpu.memory_space<vmem>>, vector<5x32xf32>
    tpu.vector_store %arg12[%c18, %c0_81], %192 {strides = array<i32>} : memref<32x32xf32, #tpu.memory_space<vmem>>, vector<5x32xf32>,
    %194 = vector.extract_strided_slice %5 {offsets = [0, 64], sizes = [12, 32], strides = [1, 1]} : vector<32x224xf32> to vector<12x32xf32>
    %195 = vector.extract_strided_slice %8 {offsets = [2, 0], sizes = [1, 12], strides = [1, 1]} : vector<7x32xf32> to vector<1x12xf32>
    %196 = vector.extract_strided_slice %11 {offsets = [23, 2], sizes = [8, 1], strides = [1, 1]} : vector<32x7xf32> to vector<8x1xf32>
    %197 = vector.broadcast %196 : vector<8x1xf32> to vector<8x12xf32>
    %198 = vector.broadcast %195 : vector<1x12xf32> to vector<8x12xf32>
    %199 = arith.addf %197, %198 : vector<8x12xf32>
    %cst_82 = arith.constant 0.000000e+00 : f32
    %200 = vector.broadcast %cst_82 : f32 to vector<8x12xf32>
    %201 = arith.cmpf oge, %199, %200 : vector<8x12xf32>
    %cst_83 = arith.constant 2.000000e-01 : f32
    %202 = vector.broadcast %cst_83 : f32 to vector<8x12xf32>
    %203 = arith.mulf %202, %199 : vector<8x12xf32>
    %204 = arith.select %201, %199, %203 : vector<8x12xi1>, vector<8x12xf32>
    %c2 = arith.constant 2 : index
    %c0_84 = arith.constant 0 : index
    %c0_85 = arith.constant 0 : index
    %205 = vector.load %arg1[%c2, %c0_84, %c0_85] : memref<7x12x12xf32, #tpu.memory_space<vmem>>, vector<1x12x12xf32>
    %206 = vector.shape_cast %205 : vector<1x12x12xf32> to vector<12x12xf32>
    %207 = vector.extract_strided_slice %206 {offsets = [0, 0], sizes = [8, 12], strides = [1, 1]} : vector<12x12xf32> to vector<8x12xf32>
    %208 = arith.addf %204, %207 : vector<8x12xf32>
    %cst_86 = arith.constant dense<0xFF800000> : vector<8xf32>
    %209 = vector.multi_reduction <maximumf>, %208, %cst_86 [1] : vector<8x12xf32> to vector<8xf32>
    %210 = vector.shape_cast %209 : vector<8xf32> to vector<8x1xf32>
    %c2_87 = arith.constant 2 : index
    %c0_88 = arith.constant 0 : index
    %c0_89 = arith.constant 0 : index
    %211 = vector.load %arg2[%c2_87, %c0_88, %c0_89] : memref<7x12x12xf32, #tpu.memory_space<vmem>>, vector<1x12x12xf32>
    %212 = vector.shape_cast %211 : vector<1x12x12xf32> to vector<12x12xf32>
    %213 = vector.extract_strided_slice %212 {offsets = [0, 0], sizes = [8, 12], strides = [1, 1]} : vector<12x12xf32> to vector<8x12xf32>
    %214 = vector.broadcast %210 : vector<8x1xf32> to vector<8x12xf32>
    %215 = arith.subf %208, %214 : vector<8x12xf32>
    %216 = math.exp %215 : vector<8x12xf32>
    %217 = arith.mulf %213, %216 : vector<8x12xf32>
    %cst_90 = arith.constant dense<0.000000e+00> : vector<8xf32>
    %218 = vector.multi_reduction <add>, %217, %cst_90 [1] : vector<8x12xf32> to vector<8xf32>
    %219 = vector.shape_cast %218 : vector<8xf32> to vector<8x1xf32>
    %cst_91 = arith.constant 1.000000e-16 : f32
    %220 = vector.broadcast %cst_91 : f32 to vector<8x1xf32>
    %221 = arith.maximumf %219, %220 : vector<8x1xf32>
    %222 = tpu.reciprocal %221 {approx = true} : vector<8x1xf32> -> vector<8x1xf32>
    %223 = vector.broadcast %222 : vector<8x1xf32> to vector<8x12xf32>
    %224 = arith.mulf %217, %223 : vector<8x12xf32>
    %cst_92 = arith.constant dense<0.000000e+00> : vector<8x32xf32>
    %225 = tpu.matmul %224, %194, %cst_92 {dimension_numbers = #tpu.dot_dimension_numbers<[1], [0], [0], [1], [0, 0, 1, 1], [], []>} : vector<8x12xf32>, vector<12x32xf32>, vector<8x32xf32> -> vector<8x32xf32>
    %226 = vector.extract_strided_slice %5 {offsets = [23, 96], sizes = [8, 32], strides = [1, 1]} : vector<32x224xf32> to vector<8x32xf32>
    %227 = vector.extract_strided_slice %8 {offsets = [3, 23], sizes = [1, 8], strides = [1, 1]} : vector<7x32xf32> to vector<1x8xf32>
    %228 = vector.extract_strided_slice %11 {offsets = [23, 3], sizes = [8, 1], strides = [1, 1]} : vector<32x7xf32> to vector<8x1xf32>
    %229 = vector.broadcast %228 : vector<8x1xf32> to vector<8x8xf32>
    %230 = vector.broadcast %227 : vector<1x8xf32> to vector<8x8xf32>
    %231 = arith.addf %229, %230 : vector<8x8xf32>
    %cst_93 = arith.constant 0.000000e+00 : f32
    %232 = vector.broadcast %cst_93 : f32 to vector<8x8xf32>
    %233 = arith.cmpf oge, %231, %232 : vector<8x8xf32>
    %cst_94 = arith.constant 2.000000e-01 : f32
    %234 = vector.broadcast %cst_94 : f32 to vector<8x8xf32>
    %235 = arith.mulf %234, %231 : vector<8x8xf32>
    %236 = arith.select %233, %231, %235 : vector<8x8xi1>, vector<8x8xf32>
    %c3 = arith.constant 3 : index
    %c0_95 = arith.constant 0 : index
    %c0_96 = arith.constant 0 : index
    %237 = vector.load %arg1[%c3, %c0_95, %c0_96] : memref<7x12x12xf32, #tpu.memory_space<vmem>>, vector<1x12x12xf32>
    %238 = vector.shape_cast %237 : vector<1x12x12xf32> to vector<12x12xf32>
    %239 = vector.extract_strided_slice %238 {offsets = [0, 0], sizes = [8, 8], strides = [1, 1]} : vector<12x12xf32> to vector<8x8xf32>
    %240 = arith.addf %236, %239 : vector<8x8xf32>
    %cst_97 = arith.constant dense<0xFF800000> : vector<8xf32>
    %241 = vector.multi_reduction <maximumf>, %240, %cst_97 [1] : vector<8x8xf32> to vector<8xf32>
    %242 = vector.shape_cast %241 : vector<8xf32> to vector<8x1xf32>
    %c3_98 = arith.constant 3 : index
    %c0_99 = arith.constant 0 : index
    %c0_100 = arith.constant 0 : index
    %243 = vector.load %arg2[%c3_98, %c0_99, %c0_100] : memref<7x12x12xf32, #tpu.memory_space<vmem>>, vector<1x12x12xf32>
    %244 = vector.shape_cast %243 : vector<1x12x12xf32> to vector<12x12xf32>
    %245 = vector.extract_strided_slice %244 {offsets = [0, 0], sizes = [8, 8], strides = [1, 1]} : vector<12x12xf32> to vector<8x8xf32>
    %246 = vector.broadcast %242 : vector<8x1xf32> to vector<8x8xf32>
    %247 = arith.subf %240, %246 : vector<8x8xf32>
    %248 = math.exp %247 : vector<8x8xf32>
    %249 = arith.mulf %245, %248 : vector<8x8xf32>
    %cst_101 = arith.constant dense<0.000000e+00> : vector<8xf32>
    %250 = vector.multi_reduction <add>, %249, %cst_101 [1] : vector<8x8xf32> to vector<8xf32>
    %251 = vector.shape_cast %250 : vector<8xf32> to vector<8x1xf32>
    %cst_102 = arith.constant 1.000000e-16 : f32
    %252 = vector.broadcast %cst_102 : f32 to vector<8x1xf32>
    %253 = arith.maximumf %251, %252 : vector<8x1xf32>
    %254 = tpu.reciprocal %253 {approx = true} : vector<8x1xf32> -> vector<8x1xf32>
    %255 = vector.broadcast %254 : vector<8x1xf32> to vector<8x8xf32>
    %256 = arith.mulf %249, %255 : vector<8x8xf32>
    %cst_103 = arith.constant dense<0.000000e+00> : vector<8x32xf32>
    %257 = tpu.matmul %256, %226, %cst_103 {dimension_numbers = #tpu.dot_dimension_numbers<[1], [0], [0], [1], [0, 0, 1, 1], [], []>} : vector<8x8xf32>, vector<8x32xf32>, vector<8x32xf32> -> vector<8x32xf32>
    %258 = arith.addf %225, %257 : vector<8x32xf32>
    %259 = vector.extract_strided_slice %13 {offsets = [3, 0], sizes = [1, 32], strides = [1, 1]} : vector<4x32xf32> to vector<1x32xf32>
    %260 = vector.broadcast %259 : vector<1x32xf32> to vector<8x32xf32>
    %261 = arith.addf %258, %260 : vector<8x32xf32>
    %cst_104 = arith.constant 0.000000e+00 : f32
    %262 = vector.broadcast %cst_104 : f32 to vector<8x32xf32>
    %263 = arith.maximumf %261, %262 : vector<8x32xf32>
    %c23 = arith.constant 23 : index
    %c0_105 = arith.constant 0 : index
    %264 = vector.load %arg12[%c23, %c0_105] : memref<32x32xf32, #tpu.memory_space<vmem>>, vector<8x32xf32>
    tpu.vector_store %arg12[%c23, %c0_105], %263 {strides = array<i32>} : memref<32x32xf32, #tpu.memory_space<vmem>>, vector<8x32xf32>,
    %c0_106 = arith.constant 0 : index
    %c0_107 = arith.constant 0 : index
    %265 = vector.load %arg12[%c0_106, %c0_107] : memref<32x32xf32, #tpu.memory_space<vmem>>, vector<32x32xf32>
    %c1_108 = arith.constant 1 : index
    %c0_109 = arith.constant 0 : index
    %c0_110 = arith.constant 0 : index
    %266 = vector.load %arg3[%c1_108, %c0_109, %c0_110] : memref<2x32x224xf32, #tpu.memory_space<vmem>>, vector<1x32x224xf32>
    %267 = vector.shape_cast %266 : vector<1x32x224xf32> to vector<32x224xf32>
    %cst_111 = arith.constant dense<0.000000e+00> : vector<32x224xf32>
    %268 = tpu.matmul %265, %267, %cst_111 {dimension_numbers = #tpu.dot_dimension_numbers<[1], [0], [0], [1], [0, 0, 1, 1], [], []>} : vector<32x32xf32>, vector<32x224xf32>, vector<32x224xf32> -> vector<32x224xf32>
    %c1_112 = arith.constant 1 : index
    %c0_113 = arith.constant 0 : index
    %c0_114 = arith.constant 0 : index
    %269 = vector.load %arg4[%c1_112, %c0_113, %c0_114] : memref<2x7x32xf32, #tpu.memory_space<vmem>>, vector<1x7x32xf32>
    %270 = vector.shape_cast %269 : vector<1x7x32xf32> to vector<7x32xf32>
    %cst_115 = arith.constant dense<0.000000e+00> : vector<7x32xf32>
    %271 = tpu.matmul %270, %265, %cst_115 {dimension_numbers = #tpu.dot_dimension_numbers<[1], [1], [0], [0], [0, 0, 1, 0], [], []>} : vector<7x32xf32>, vector<32x32xf32>, vector<7x32xf32> -> vector<7x32xf32>
    %c1_116 = arith.constant 1 : index
    %c0_117 = arith.constant 0 : index
    %c0_118 = arith.constant 0 : index
    %272 = vector.load %arg5[%c1_116, %c0_117, %c0_118] : memref<2x32x7xf32, #tpu.memory_space<vmem>>, vector<1x32x7xf32>
    %273 = vector.shape_cast %272 : vector<1x32x7xf32> to vector<32x7xf32>
    %cst_119 = arith.constant dense<0.000000e+00> : vector<32x7xf32>
    %274 = tpu.matmul %265, %273, %cst_119 {dimension_numbers = #tpu.dot_dimension_numbers<[1], [0], [0], [1], [0, 0, 1, 1], [], []>} : vector<32x32xf32>, vector<32x7xf32>, vector<32x7xf32> -> vector<32x7xf32>
    %c1_120 = arith.constant 1 : index
    %c0_121 = arith.constant 0 : index
    %c0_122 = arith.constant 0 : index
    %275 = vector.load %arg6[%c1_120, %c0_121, %c0_122] : memref<2x4x32xf32, #tpu.memory_space<vmem>>, vector<1x4x32xf32>
    %276 = vector.shape_cast %275 : vector<1x4x32xf32> to vector<4x32xf32>
    %277 = vector.extract_strided_slice %268 {offsets = [12, 128], sizes = [6, 32], strides = [1, 1]} : vector<32x224xf32> to vector<6x32xf32>
    %278 = vector.extract_strided_slice %271 {offsets = [4, 12], sizes = [1, 6], strides = [1, 1]} : vector<7x32xf32> to vector<1x6xf32>
    %279 = vector.extract_strided_slice %274 {offsets = [0, 4], sizes = [12, 1], strides = [1, 1]} : vector<32x7xf32> to vector<12x1xf32>
    %280 = vector.broadcast %279 : vector<12x1xf32> to vector<12x6xf32>
    %281 = vector.broadcast %278 : vector<1x6xf32> to vector<12x6xf32>
    %282 = arith.addf %280, %281 : vector<12x6xf32>
    %cst_123 = arith.constant 0.000000e+00 : f32
    %283 = vector.broadcast %cst_123 : f32 to vector<12x6xf32>
    %284 = arith.cmpf oge, %282, %283 : vector<12x6xf32>
    %cst_124 = arith.constant 2.000000e-01 : f32
    %285 = vector.broadcast %cst_124 : f32 to vector<12x6xf32>
    %286 = arith.mulf %285, %282 : vector<12x6xf32>
    %287 = arith.select %284, %282, %286 : vector<12x6xi1>, vector<12x6xf32>
    %c4_125 = arith.constant 4 : index
    %c0_126 = arith.constant 0 : index
    %c0_127 = arith.constant 0 : index
    %288 = vector.load %arg1[%c4_125, %c0_126, %c0_127] : memref<7x12x12xf32, #tpu.memory_space<vmem>>, vector<1x12x12xf32>
    %289 = vector.shape_cast %288 : vector<1x12x12xf32> to vector<12x12xf32>
    %290 = vector.extract_strided_slice %289 {offsets = [0, 0], sizes = [12, 6], strides = [1, 1]} : vector<12x12xf32> to vector<12x6xf32>
    %291 = arith.addf %287, %290 : vector<12x6xf32>
    %cst_128 = arith.constant dense<0xFF800000> : vector<12xf32>
    %292 = vector.multi_reduction <maximumf>, %291, %cst_128 [1] : vector<12x6xf32> to vector<12xf32>
    %293 = vector.shape_cast %292 : vector<12xf32> to vector<12x1xf32>
    %c4_129 = arith.constant 4 : index
    %c0_130 = arith.constant 0 : index
    %c0_131 = arith.constant 0 : index
    %294 = vector.load %arg2[%c4_129, %c0_130, %c0_131] : memref<7x12x12xf32, #tpu.memory_space<vmem>>, vector<1x12x12xf32>
    %295 = vector.shape_cast %294 : vector<1x12x12xf32> to vector<12x12xf32>
    %296 = vector.extract_strided_slice %295 {offsets = [0, 0], sizes = [12, 6], strides = [1, 1]} : vector<12x12xf32> to vector<12x6xf32>
    %297 = vector.broadcast %293 : vector<12x1xf32> to vector<12x6xf32>
    %298 = arith.subf %291, %297 : vector<12x6xf32>
    %299 = math.exp %298 : vector<12x6xf32>
    %300 = arith.mulf %296, %299 : vector<12x6xf32>
    %cst_132 = arith.constant dense<0.000000e+00> : vector<12xf32>
    %301 = vector.multi_reduction <add>, %300, %cst_132 [1] : vector<12x6xf32> to vector<12xf32>
    %302 = vector.shape_cast %301 : vector<12xf32> to vector<12x1xf32>
    %cst_133 = arith.constant 1.000000e-16 : f32
    %303 = vector.broadcast %cst_133 : f32 to vector<12x1xf32>
    %304 = arith.maximumf %302, %303 : vector<12x1xf32>
    %305 = tpu.reciprocal %304 {approx = true} : vector<12x1xf32> -> vector<12x1xf32>
    %306 = vector.broadcast %305 : vector<12x1xf32> to vector<12x6xf32>
    %307 = arith.mulf %300, %306 : vector<12x6xf32>
    %cst_134 = arith.constant dense<0.000000e+00> : vector<12x32xf32>
    %308 = tpu.matmul %307, %277, %cst_134 {dimension_numbers = #tpu.dot_dimension_numbers<[1], [0], [0], [1], [0, 0, 1, 1], [], []>} : vector<12x6xf32>, vector<6x32xf32>, vector<12x32xf32> -> vector<12x32xf32>
    %309 = vector.extract_strided_slice %268 {offsets = [18, 160], sizes = [5, 32], strides = [1, 1]} : vector<32x224xf32> to vector<5x32xf32>
    %310 = vector.extract_strided_slice %271 {offsets = [5, 18], sizes = [1, 5], strides = [1, 1]} : vector<7x32xf32> to vector<1x5xf32>
    %311 = vector.extract_strided_slice %274 {offsets = [0, 5], sizes = [12, 1], strides = [1, 1]} : vector<32x7xf32> to vector<12x1xf32>
    %312 = vector.broadcast %311 : vector<12x1xf32> to vector<12x5xf32>
    %313 = vector.broadcast %310 : vector<1x5xf32> to vector<12x5xf32>
    %314 = arith.addf %312, %313 : vector<12x5xf32>
    %cst_135 = arith.constant 0.000000e+00 : f32
    %315 = vector.broadcast %cst_135 : f32 to vector<12x5xf32>
    %316 = arith.cmpf oge, %314, %315 : vector<12x5xf32>
    %cst_136 = arith.constant 2.000000e-01 : f32
    %317 = vector.broadcast %cst_136 : f32 to vector<12x5xf32>
    %318 = arith.mulf %317, %314 : vector<12x5xf32>
    %319 = arith.select %316, %314, %318 : vector<12x5xi1>, vector<12x5xf32>
    %c5_137 = arith.constant 5 : index
    %c0_138 = arith.constant 0 : index
    %c0_139 = arith.constant 0 : index
    %320 = vector.load %arg1[%c5_137, %c0_138, %c0_139] : memref<7x12x12xf32, #tpu.memory_space<vmem>>, vector<1x12x12xf32>
    %321 = vector.shape_cast %320 : vector<1x12x12xf32> to vector<12x12xf32>
    %322 = vector.extract_strided_slice %321 {offsets = [0, 0], sizes = [12, 5], strides = [1, 1]} : vector<12x12xf32> to vector<12x5xf32>
    %323 = arith.addf %319, %322 : vector<12x5xf32>
    %cst_140 = arith.constant dense<0xFF800000> : vector<12xf32>
    %324 = vector.multi_reduction <maximumf>, %323, %cst_140 [1] : vector<12x5xf32> to vector<12xf32>
    %325 = vector.shape_cast %324 : vector<12xf32> to vector<12x1xf32>
    %c5_141 = arith.constant 5 : index
    %c0_142 = arith.constant 0 : index
    %c0_143 = arith.constant 0 : index
    %326 = vector.load %arg2[%c5_141, %c0_142, %c0_143] : memref<7x12x12xf32, #tpu.memory_space<vmem>>, vector<1x12x12xf32>
    %327 = vector.shape_cast %326 : vector<1x12x12xf32> to vector<12x12xf32>
    %328 = vector.extract_strided_slice %327 {offsets = [0, 0], sizes = [12, 5], strides = [1, 1]} : vector<12x12xf32> to vector<12x5xf32>
    %329 = vector.broadcast %325 : vector<12x1xf32> to vector<12x5xf32>
    %330 = arith.subf %323, %329 : vector<12x5xf32>
    %331 = math.exp %330 : vector<12x5xf32>
    %332 = arith.mulf %328, %331 : vector<12x5xf32>
    %cst_144 = arith.constant dense<0.000000e+00> : vector<12xf32>
    %333 = vector.multi_reduction <add>, %332, %cst_144 [1] : vector<12x5xf32> to vector<12xf32>
    %334 = vector.shape_cast %333 : vector<12xf32> to vector<12x1xf32>
    %cst_145 = arith.constant 1.000000e-16 : f32
    %335 = vector.broadcast %cst_145 : f32 to vector<12x1xf32>
    %336 = arith.maximumf %334, %335 : vector<12x1xf32>
    %337 = tpu.reciprocal %336 {approx = true} : vector<12x1xf32> -> vector<12x1xf32>
    %338 = vector.broadcast %337 : vector<12x1xf32> to vector<12x5xf32>
    %339 = arith.mulf %332, %338 : vector<12x5xf32>
    %cst_146 = arith.constant dense<0.000000e+00> : vector<12x32xf32>
    %340 = tpu.matmul %339, %309, %cst_146 {dimension_numbers = #tpu.dot_dimension_numbers<[1], [0], [0], [1], [0, 0, 1, 1], [], []>} : vector<12x5xf32>, vector<5x32xf32>, vector<12x32xf32> -> vector<12x32xf32>
    %341 = arith.addf %308, %340 : vector<12x32xf32>
    %342 = vector.extract_strided_slice %276 {offsets = [0, 0], sizes = [1, 32], strides = [1, 1]} : vector<4x32xf32> to vector<1x32xf32>
    %343 = vector.broadcast %342 : vector<1x32xf32> to vector<12x32xf32>
    %344 = arith.addf %341, %343 : vector<12x32xf32>
    %cst_147 = arith.constant 0.000000e+00 : f32
    %345 = vector.broadcast %cst_147 : f32 to vector<12x32xf32>
    %346 = arith.maximumf %344, %345 : vector<12x32xf32>
    %347 = vector.extract_strided_slice %268 {offsets = [0, 64], sizes = [12, 32], strides = [1, 1]} : vector<32x224xf32> to vector<12x32xf32>
    %348 = vector.extract_strided_slice %271 {offsets = [2, 0], sizes = [1, 12], strides = [1, 1]} : vector<7x32xf32> to vector<1x12xf32>
    %349 = vector.extract_strided_slice %274 {offsets = [23, 2], sizes = [8, 1], strides = [1, 1]} : vector<32x7xf32> to vector<8x1xf32>
    %350 = vector.broadcast %349 : vector<8x1xf32> to vector<8x12xf32>
    %351 = vector.broadcast %348 : vector<1x12xf32> to vector<8x12xf32>
    %352 = arith.addf %350, %351 : vector<8x12xf32>
    %cst_148 = arith.constant 0.000000e+00 : f32
    %353 = vector.broadcast %cst_148 : f32 to vector<8x12xf32>
    %354 = arith.cmpf oge, %352, %353 : vector<8x12xf32>
    %cst_149 = arith.constant 2.000000e-01 : f32
    %355 = vector.broadcast %cst_149 : f32 to vector<8x12xf32>
    %356 = arith.mulf %355, %352 : vector<8x12xf32>
    %357 = arith.select %354, %352, %356 : vector<8x12xi1>, vector<8x12xf32>
    %c2_150 = arith.constant 2 : index
    %c0_151 = arith.constant 0 : index
    %c0_152 = arith.constant 0 : index
    %358 = vector.load %arg1[%c2_150, %c0_151, %c0_152] : memref<7x12x12xf32, #tpu.memory_space<vmem>>, vector<1x12x12xf32>
    %359 = vector.shape_cast %358 : vector<1x12x12xf32> to vector<12x12xf32>
    %360 = vector.extract_strided_slice %359 {offsets = [0, 0], sizes = [8, 12], strides = [1, 1]} : vector<12x12xf32> to vector<8x12xf32>
    %361 = arith.addf %357, %360 : vector<8x12xf32>
    %cst_153 = arith.constant dense<0xFF800000> : vector<8xf32>
    %362 = vector.multi_reduction <maximumf>, %361, %cst_153 [1] : vector<8x12xf32> to vector<8xf32>
    %363 = vector.shape_cast %362 : vector<8xf32> to vector<8x1xf32>
    %c2_154 = arith.constant 2 : index
    %c0_155 = arith.constant 0 : index
    %c0_156 = arith.constant 0 : index
    %364 = vector.load %arg2[%c2_154, %c0_155, %c0_156] : memref<7x12x12xf32, #tpu.memory_space<vmem>>, vector<1x12x12xf32>
    %365 = vector.shape_cast %364 : vector<1x12x12xf32> to vector<12x12xf32>
    %366 = vector.extract_strided_slice %365 {offsets = [0, 0], sizes = [8, 12], strides = [1, 1]} : vector<12x12xf32> to vector<8x12xf32>
    %367 = vector.broadcast %363 : vector<8x1xf32> to vector<8x12xf32>
    %368 = arith.subf %361, %367 : vector<8x12xf32>
    %369 = math.exp %368 : vector<8x12xf32>
    %370 = arith.mulf %366, %369 : vector<8x12xf32>
    %cst_157 = arith.constant dense<0.000000e+00> : vector<8xf32>
    %371 = vector.multi_reduction <add>, %370, %cst_157 [1] : vector<8x12xf32> to vector<8xf32>
    %372 = vector.shape_cast %371 : vector<8xf32> to vector<8x1xf32>
    %cst_158 = arith.constant 1.000000e-16 : f32
    %373 = vector.broadcast %cst_158 : f32 to vector<8x1xf32>
    %374 = arith.maximumf %372, %373 : vector<8x1xf32>
    %375 = tpu.reciprocal %374 {approx = true} : vector<8x1xf32> -> vector<8x1xf32>
    %376 = vector.broadcast %375 : vector<8x1xf32> to vector<8x12xf32>
    %377 = arith.mulf %370, %376 : vector<8x12xf32>
    %cst_159 = arith.constant dense<0.000000e+00> : vector<8x32xf32>
    %378 = tpu.matmul %377, %347, %cst_159 {dimension_numbers = #tpu.dot_dimension_numbers<[1], [0], [0], [1], [0, 0, 1, 1], [], []>} : vector<8x12xf32>, vector<12x32xf32>, vector<8x32xf32> -> vector<8x32xf32>
    %379 = vector.extract_strided_slice %268 {offsets = [23, 96], sizes = [8, 32], strides = [1, 1]} : vector<32x224xf32> to vector<8x32xf32>
    %380 = vector.extract_strided_slice %271 {offsets = [3, 23], sizes = [1, 8], strides = [1, 1]} : vector<7x32xf32> to vector<1x8xf32>
    %381 = vector.extract_strided_slice %274 {offsets = [23, 3], sizes = [8, 1], strides = [1, 1]} : vector<32x7xf32> to vector<8x1xf32>
    %382 = vector.broadcast %381 : vector<8x1xf32> to vector<8x8xf32>
    %383 = vector.broadcast %380 : vector<1x8xf32> to vector<8x8xf32>
    %384 = arith.addf %382, %383 : vector<8x8xf32>
    %cst_160 = arith.constant 0.000000e+00 : f32
    %385 = vector.broadcast %cst_160 : f32 to vector<8x8xf32>
    %386 = arith.cmpf oge, %384, %385 : vector<8x8xf32>
    %cst_161 = arith.constant 2.000000e-01 : f32
    %387 = vector.broadcast %cst_161 : f32 to vector<8x8xf32>
    %388 = arith.mulf %387, %384 : vector<8x8xf32>
    %389 = arith.select %386, %384, %388 : vector<8x8xi1>, vector<8x8xf32>
    %c3_162 = arith.constant 3 : index
    %c0_163 = arith.constant 0 : index
    %c0_164 = arith.constant 0 : index
    %390 = vector.load %arg1[%c3_162, %c0_163, %c0_164] : memref<7x12x12xf32, #tpu.memory_space<vmem>>, vector<1x12x12xf32>
    %391 = vector.shape_cast %390 : vector<1x12x12xf32> to vector<12x12xf32>
    %392 = vector.extract_strided_slice %391 {offsets = [0, 0], sizes = [8, 8], strides = [1, 1]} : vector<12x12xf32> to vector<8x8xf32>
    %393 = arith.addf %389, %392 : vector<8x8xf32>
    %cst_165 = arith.constant dense<0xFF800000> : vector<8xf32>
    %394 = vector.multi_reduction <maximumf>, %393, %cst_165 [1] : vector<8x8xf32> to vector<8xf32>
    %395 = vector.shape_cast %394 : vector<8xf32> to vector<8x1xf32>
    %c3_166 = arith.constant 3 : index
    %c0_167 = arith.constant 0 : index
    %c0_168 = arith.constant 0 : index
    %396 = vector.load %arg2[%c3_166, %c0_167, %c0_168] : memref<7x12x12xf32, #tpu.memory_space<vmem>>, vector<1x12x12xf32>
    %397 = vector.shape_cast %396 : vector<1x12x12xf32> to vector<12x12xf32>
    %398 = vector.extract_strided_slice %397 {offsets = [0, 0], sizes = [8, 8], strides = [1, 1]} : vector<12x12xf32> to vector<8x8xf32>
    %399 = vector.broadcast %395 : vector<8x1xf32> to vector<8x8xf32>
    %400 = arith.subf %393, %399 : vector<8x8xf32>
    %401 = math.exp %400 : vector<8x8xf32>
    %402 = arith.mulf %398, %401 : vector<8x8xf32>
    %cst_169 = arith.constant dense<0.000000e+00> : vector<8xf32>
    %403 = vector.multi_reduction <add>, %402, %cst_169 [1] : vector<8x8xf32> to vector<8xf32>
    %404 = vector.shape_cast %403 : vector<8xf32> to vector<8x1xf32>
    %cst_170 = arith.constant 1.000000e-16 : f32
    %405 = vector.broadcast %cst_170 : f32 to vector<8x1xf32>
    %406 = arith.maximumf %404, %405 : vector<8x1xf32>
    %407 = tpu.reciprocal %406 {approx = true} : vector<8x1xf32> -> vector<8x1xf32>
    %408 = vector.broadcast %407 : vector<8x1xf32> to vector<8x8xf32>
    %409 = arith.mulf %402, %408 : vector<8x8xf32>
    %cst_171 = arith.constant dense<0.000000e+00> : vector<8x32xf32>
    %410 = tpu.matmul %409, %379, %cst_171 {dimension_numbers = #tpu.dot_dimension_numbers<[1], [0], [0], [1], [0, 0, 1, 1], [], []>} : vector<8x8xf32>, vector<8x32xf32>, vector<8x32xf32> -> vector<8x32xf32>
    %411 = arith.addf %378, %410 : vector<8x32xf32>
    %412 = vector.extract_strided_slice %276 {offsets = [3, 0], sizes = [1, 32], strides = [1, 1]} : vector<4x32xf32> to vector<1x32xf32>
    %413 = vector.broadcast %412 : vector<1x32xf32> to vector<8x32xf32>
    %414 = arith.addf %411, %413 : vector<8x32xf32>
    %cst_172 = arith.constant 0.000000e+00 : f32
    %415 = vector.broadcast %cst_172 : f32 to vector<8x32xf32>
    %416 = arith.maximumf %414, %415 : vector<8x32xf32>
    %c0_173 = arith.constant 0 : index
    %c0_174 = arith.constant 0 : index
    %417 = vector.load %arg7[%c0_173, %c0_174] : memref<2x12xf32, #tpu.memory_space<vmem>>, vector<2x12xf32>
    %cst_175 = arith.constant dense<0.000000e+00> : vector<2x32xf32>
    %418 = tpu.matmul %417, %346, %cst_175 {dimension_numbers = #tpu.dot_dimension_numbers<[1], [0], [0], [1], [0, 0, 1, 1], [], []>} : vector<2x12xf32>, vector<12x32xf32>, vector<2x32xf32> -> vector<2x32xf32>
    %c0_176 = arith.constant 0 : index
    %c0_177 = arith.constant 0 : index
    %419 = vector.load %arg8[%c0_176, %c0_177] : memref<2x8xf32, #tpu.memory_space<vmem>>, vector<2x8xf32>
    %cst_178 = arith.constant dense<0.000000e+00> : vector<2x32xf32>
    %420 = tpu.matmul %419, %416, %cst_178 {dimension_numbers = #tpu.dot_dimension_numbers<[1], [0], [0], [1], [0, 0, 1, 1], [], []>} : vector<2x8xf32>, vector<8x32xf32>, vector<2x32xf32> -> vector<2x32xf32>
    %c0_179 = arith.constant 0 : index
    %c0_180 = arith.constant 0 : index
    %421 = vector.load %arg9[%c0_179, %c0_180] : memref<64x2xf32, #tpu.memory_space<vmem>>, vector<32x2xf32>
    %cst_181 = arith.constant dense<0.000000e+00> : vector<2x2xf32>
    %422 = tpu.matmul %418, %421, %cst_181 {dimension_numbers = #tpu.dot_dimension_numbers<[1], [0], [0], [1], [0, 0, 1, 1], [], []>} : vector<2x32xf32>, vector<32x2xf32>, vector<2x2xf32> -> vector<2x2xf32>
    %c32 = arith.constant 32 : index
    %c0_182 = arith.constant 0 : index
    %423 = vector.load %arg9[%c32, %c0_182] : memref<64x2xf32, #tpu.memory_space<vmem>>, vector<32x2xf32>
    %cst_183 = arith.constant dense<0.000000e+00> : vector<2x2xf32>
    %424 = tpu.matmul %420, %423, %cst_183 {dimension_numbers = #tpu.dot_dimension_numbers<[1], [0], [0], [1], [0, 0, 1, 1], [], []>} : vector<2x32xf32>, vector<32x2xf32>, vector<2x2xf32> -> vector<2x2xf32>
    %425 = arith.addf %422, %424 : vector<2x2xf32>
    %c0_184 = arith.constant 0 : index
    %c0_185 = arith.constant 0 : index
    %426 = vector.load %arg10[%c0_184, %c0_185] : memref<1x2xf32, #tpu.memory_space<vmem>>, vector<1x2xf32>
    %427 = vector.broadcast %426 : vector<1x2xf32> to vector<2x2xf32>
    %428 = arith.addf %425, %427 : vector<2x2xf32>
    %c0_186 = arith.constant 0 : index
    %c0_187 = arith.constant 0 : index
    %429 = vector.load %arg11[%c0_186, %c0_187] : memref<2x2xf32, #tpu.memory_space<vmem>>, vector<2x2xf32>
    tpu.vector_store %arg11[%c0_186, %c0_187], %428 {strides = array<i32>} : memref<2x2xf32, #tpu.memory_space<vmem>>, vector<2x2xf32>,
    return
  }
}

</mosaic_0001>

<bundles_post_ra>
// kernel: tpu_custom_call.1
= control target key start
LH: loop header
LB: loop body
LE: loop exit
PB: predicated region body
PF: predicated region fallthrough
CT: control target
= control target key end

     0   :  { %vm3697_vm0 = vcmask 261120   ;;  %v2990_v4 = vmov 0.0   ;;  %vm3698_vm1 = vmmov 0   ;;  %s3679_s0 = inlined_call_operand.vmem [shape: f32[32,32], index: 0, kind: input, shape index: {}]   ;;  %s3680_s1 = inlined_call_operand.vmem [shape: f32[7,12,12], index: 1, kind: input, shape index: {}]   ;;  %s3681_s2 = inlined_call_operand.vmem [shape: f32[7,12,12], index: 2, kind: input, shape index: {}]   ;;  %s3682_s3 = inlined_call_operand.vmem [shape: f32[2,32,224], index: 3, kind: input, shape index: {}]   ;;  %s3683_s4 = inlined_call_operand.vmem [shape: f32[2,7,32], index: 4, kind: input, shape index: {}]   ;;  %s3684_s5 = inlined_call_operand.vmem [shape: f32[2,32,7], index: 5, kind: input, shape index: {}]   ;;  %s3685_s6 = inlined_call_operand.vmem [shape: f32[2,4,32], index: 6, kind: input, shape index: {}]   ;;  %s3686_s7 = inlined_call_operand.vmem [shape: f32[2,12], index: 7, kind: input, shape index: {}]   ;;  %s3687_s8 = inlined_call_operand.vmem [shape: f32[2,8], index: 8, kind: input, shape index: {}]   ;;  %s3688_s9 = inlined_call_operand.vmem [shape: f32[64,2], index: 9, kind: input, shape index: {}]   ;;  %s3689_s10 = inlined_call_operand.vmem [shape: f32[1,2], index: 10, kind: input, shape index: {}]   ;;  %s3690_s11 = inlined_call_operand.hbm [shape: f32[2,2], index: 11, kind: output, shape index: {}]  }
   0x1   :  { %v59_v0 = vld [vmem:[%s3682_s3 + $0x38] sm:$0xff]  ;;  %v58_v1 = vld [vmem:[%s3682_s3 + $0x30] sm:$0xff]  ;;  %v57_v2 = vld [vmem:[%s3682_s3 + $0x28] sm:$0xff]  ;;  %136 = vmatprep.mubr.f32.mxu0 %v2990_v4  ;;  %2713 = vmatprep.subr.mxu1 %v2990_v4 }
   0x2   :  { %96 = vmatprep.subr.mxu0 %v59_v0  ;;  %v56_v3 = vld [vmem:[%s3682_s3 + $0x20] sm:$0xff]  ;;  %v55_v5 = vld [vmem:[%s3682_s3 + $0x18] sm:$0xff]  ;;  %v54_v7 = vld [vmem:[%s3682_s3 + $0x10] sm:$0xff]  ;;  %2721 = vmatprep.mubr.msk.f32.mxu1 %vm3698_vm1, %v2990_v4 }
   0x3   :  { %97 = vmatpush1.msra.mxu0 %v58_v1  ;;  %v39_v6 = vld [vmem:[%s3679_s0] sm:$0xff]  ;;  %v40_v8 = vld [vmem:[%s3679_s0 + $0x8] sm:$0xff]  ;;  %v41_v10 = vld [vmem:[%s3679_s0 + $0x10] sm:$0xff] }
   0x4   :  { %98 = vmatprep.subr.mxu0 %v57_v2  ;;  %44 = vst.msk [vmem:[#allocation2] sm:$0xff] %vm3697_vm0, %v39_v6  ;;  %v53_v9 = vld [vmem:[%s3682_s3 + $0x8] sm:$0xff]  ;;  %45 = vst.msk [vmem:[#allocation2 + $0x8] sm:$0xff] %vm3697_vm0, %v40_v8  ;;  %v42_v11 = vld [vmem:[%s3679_s0 + $0x18] sm:$0xff] }
   0x5   :  { %99 = vmatpush1.msra.mxu0 %v56_v3  ;;  %v52_v12 = vld [vmem:[%s3682_s3] sm:$0xff]  ;;  %46 = vst.msk [vmem:[#allocation2 + $0x10] sm:$0xff] %vm3697_vm0, %v41_v10  ;;  %47 = vst.msk [vmem:[#allocation2 + $0x18] sm:$0xff] %vm3697_vm0, %v42_v11 }
   0x6   :  { %100 = vmatprep.subr.mxu0 %v55_v5 }
   0x7   :  { %16 = vsyncpa [#allocation4], 0  ;;  %101 = vmatpush1.msra.mxu0 %v54_v7  ;;  %v237_v13 = vld [vmem:[%s3684_s5 + $0x18] sm:$0xff]  ;;  %v236_v15 = vld [vmem:[%s3684_s5 + $0x10] sm:$0xff]  ;;  %s2992_s16 = smov 18   ;;  %v2993_v24 = vmov 5   ;;  %v334_v60 = vlaneseq }
   0x8   :  { %102 = vmatprep.subr.mxu0 %v53_v9  ;;  %v235_v17 = vld [vmem:[%s3684_s5 + $0x8] sm:$0xff]  ;;  %v234_v19 = vld [vmem:[%s3684_s5] sm:$0xff]  ;;  %v2563_v22 = vld [vmem:[%s3680_s1 + $0x58] sm:$0xf]  ;;  %2879 = vset.pattern.permute.xlu0 %v2993_v24  ;;  %v2994_v25 = vmov 4   ;;  %vm3700_vm2 = vcmask 1043456  }
   0x9   :  { %103 = vmatpush1.msra.mxu0 %v52_v12  ;;  %v160_v21 = vld [vmem:[%s3683_s4] sm:$0x7f]  ;;  %v2562_v23 = vld [vmem:[%s3680_s1 + $0x50] sm:$0xff]  ;;  %427 = vrot.lane.b32.xlu1 %v2563_v22, %s2992_s16  ;;  %vm883_vm3 = vcmask 1040384   ;;  %s2995_s19 = smov 12   ;;  %v2996_v49 = vmov 3  }
   0xa   :  { %2724 = vmatprep.subr.mxu0 %v237_v13  ;;  %425 = vrot.lane.b32.xlu0 %v2562_v23, %s2992_s16  ;;  %v2558_v47 = vld [vmem:[%s3680_s1 + $0x40] sm:$0xff]  ;;  %v3188_v51 = vld [vmem:[%s3680_s1 + $0x30] sm:$0xff]  ;;  %v2997_v52 = vmov 6   ;;  %v2559_v53 = vld [vmem:[%s3680_s1 + $0x48] sm:$0xf]  ;;  %v2998_v57 = vmov 0  }
   0xb   :  { %v48_v14 = vld [vmem:[#allocation2] sm:$0xff]  ;;  %v49_v16 = vld [vmem:[#allocation2 + $0x8] sm:$0xff]  ;;  %2880 = vset.pattern.permute.xlu1 %v2994_v25  ;;  %v1133_v55 = vrot.slane %v3188_v51, 1  ;;  %s2999_s25 = smov 23   ;;  %v3000_v58 = vmov 2   ;;  %v3001_v59 = vmov 1  }
   0xc   :  { %2545 = vmatmul.mubr.msk.f32.vlgmr.msra.gmra.mxu0 %vm3697_vm0, %v48_v14  ;;  %v51_v18 = vld [vmem:[#allocation2 + $0x18] sm:$0xff]  ;;  %v50_v20 = vld [vmem:[#allocation2 + $0x10] sm:$0xff]  ;;  %v2576_v54 = vld [vmem:[%s3680_s1 + $0x60] sm:$0xff]  ;;  %v3206_v61 = vshrl.u32 %v334_v60, 7  ;;  %vm437_vm5 = vcmask 183440   ;;  %vm433_vm8 = vcmask 187536  }
   0xd   :  { %141 = vmatprep.mubr.f32.mxu0 %v2990_v4  ;;  %2725 = vmatpush3.msra.mxu0 %v237_v13  ;;  %v855_v56 = vrot.slane %v2576_v54, 6  ;;  %vm359_vm10 = vcmask 146528   ;;  %vm363_vm11 = vcmask 142432   ;;  %vm860_vm14 = vcmask 252090   ;;  %s3002_s13 = smov 110   ;;  %s3003_s14 = smov 116  }
   0xe   :  { %2726 = vmatprep.subr.mxu0 %v236_v15  ;;  %2714 = vmatpush3.xpose.msk.msra.mxu1 %vm3697_vm0, %v51_v18  ;;  %v410_v62 = vsub.s32 5, %v3206_v61  ;;  %v336_v2 = vsub.s32 4, %v3206_v61  ;;  %s3004_s15 = smov 105   ;;  %s3005_s30 = smov 96  }
   0xf   :  { %2727 = vmatpush3.msra.mxu0 %v236_v15  ;;  %2715 = vmatprep.subr.mxu1 %v2990_v4  ;;  %s3006_s12 = smov 64   ;;  %s3007_s17 = smov 32  }
  0x10   :  { %2546 = vmatmul.mubr.msk.f32.gmra.mxu0 %vm3697_vm0, %v49_v16  ;;  %2728 = vmatprep.subr.mxu0 %v235_v17 }
  0x11   :  { %147 = vmatprep.mubr.f32.mxu0 %v2990_v4  ;;  %2729 = vmatpush3.msra.mxu0 %v235_v17 }
  0x12   :  { %2730 = vmatprep.subr.mxu0 %v234_v19  ;;  %2716 = vmatpush3.xpose.msk.msra.mxu1 %vm3697_vm0, %v50_v20 }
  0x13   :  { %2731 = vmatpush3.msra.mxu0 %v234_v19  ;;  %2717 = vmatprep.subr.mxu1 %v2990_v4 }
  0x14   :  { %2547 = vmatmul.mubr.msk.f32.gmra.mxu0 %vm3697_vm0, %v50_v20  ;;  %2755 = vmatprep.subr.mxu0 %v2990_v4 }
  0x15   :  { %153 = vmatprep.mubr.f32.mxu0 %v2990_v4 }
  0x16   :  { %2718 = vmatpush3.xpose.msk.msra.mxu1 %vm3697_vm0, %v49_v16 }
  0x17   :  { %2719 = vmatprep.subr.mxu1 %v2990_v4 }
  0x18   :  { %2548 = vmatmul.mubr.msk.f32.gmra.mxu0 %vm3697_vm0, %v51_v18 }
  0x19   :  { %2732 = vmatprep.mubr.msk.f32.mxu0 %vm3697_vm0, %v48_v14 }
  0x1a   :  { %2720 = vmatpush3.xpose.msk.msra.mxu1 %vm3697_vm0, %v48_v14  ;;  %v3217_v14 = vsub.s32 3, %v3206_v61 }
  0x1c   :  { %2733 = vmatmul.mubr.msk.f32.vlgmr.msra.gmra.mxu0 %vm3697_vm0, %v49_v16 }
  0x1d   :  { %2735 = vmatprep.mubr.msk.f32.mxu0 %vm3697_vm0, %v50_v20  ;;  %2722 = vmatmul.mubr.msk.f32.vlgmr.msra.gmra.mxu1 %vm3697_vm0, %v160_v21 }
  0x20   :  { %2736 = vmatmul.mubr.msk.f32.gmra.mxu0 %vm3697_vm0, %v51_v18 }
  0x21   :  { %2757 = vmatprep.mubr.msk.f32.mxu0 %vm3698_vm1, %v2990_v4 }
  0x7b   :  { %v428_v63 = vpop.permute.xlu1 %427 }
  0x7c   :  { %v426_v0 = vpop.permute.xlu0 %425 }
  0xcc   :  { %v3160_v26 = vpop.f32.mrf.mxu0 }
  0xce   :  { %v140_v27 = vpop.f32.mrf.mxu0 }
  0xcf   :  { %v846_v27 = vsub.s32 6, %v3206_v61 }
  0xd0   :  { %v3162_v28 = vpop.f32.mrf.mxu0 }
  0xd2   :  { %v145_v29 = vpop.f32.mrf.mxu0 }
  0xd3   :  { %v564_v32 = vrot.slane %v145_v29, 4 }
  0xd4   :  { %v149_v30 = vpop.f32.mrf.mxu0 }
  0xd5   :  { %v1172_v35 = vrot.slane %v149_v30, 7 }
  0xd6   :  { %v3164_v31 = vpop.f32.mrf.mxu0 }
  0xd7   :  { %v565_v33 = vrot.slane %v3164_v31, 4  ;;  %v884_v39 = vrot.slane %v3164_v31, 7 }
  0xd8   :  { %v155_v34 = vpop.f32.mrf.mxu0 }
  0xd9   :  { %v1173_v36 = vrot.slane %v155_v34, 7  ;;  %v3168_v37 = vsel %vm3700_vm2, %v564_v32, %v565_v33 }
  0xda   :  { %v157_v38 = vpop.f32.mrf.mxu0 }
  0xdb   :  { %v885_v40 = vrot.slane %v157_v38, 7  ;;  %v3172_v41 = vsel %vm883_vm3, %v1172_v35, %v1173_v36 }
  0xdc   :  { %v2734_v42 = vpop.f32.mrf.mxu0 }
  0xdd   :  { %331 = vperm.xlu1 %2880, %v2734_v42   ;;  %405 = vperm.xlu0 %2879, %v2734_v42   ;;  %v3174_v43 = vpop.f32.mrf.mxu1  ;;  %v3177_v44 = vsel %vm883_vm3, %v884_v39, %v885_v40 }
  0xde   :  { %v304_v46 = vpop.f32.mrf.mxu0  ;;  %v411_v1 = vrot.slane %v3174_v43, %v410_v62  ;;  %v337_v7 = vrot.slane %v3174_v43, %v336_v2  ;;  %v1121_v30 = vrot.slane %v3174_v43, %v3217_v14  ;;  %v847_v38 = vrot.slane %v3174_v43, %v846_v27 }
  0xdf   :  { %v2723_v45 = vpop.f32.mrf.mxu1 }
  0xe0   :  { %v2737_v48 = vpop.f32.mrf.mxu0 }
  0xe1   :  { %326 = vperm.xlu1 %2880, %v304_v46   ;;  %401 = vperm.xlu0 %2879, %v304_v46  }
  0xe2   :  { %v314_v50 = vpop.f32.mrf.mxu0 }
  0xe5   :  { %351 = vrot.lane.b32.xlu1 %v2558_v47, %s2995_s19  ;;  %2881 = vset.pattern.permute.xlu0 %v2996_v49 }
  0xe6   :  { %1115 = vperm.xlu0 %2881, %v2737_v48   ;;  %2883 = vset.pattern.permute.xlu1 %v2996_v49 }
  0xe9   :  { %1111 = vperm.xlu1 %2883, %v314_v50  }
  0xea   :  { %2882 = vset.pattern.permute.xlu0 %v2997_v52 }
  0xeb   :  { %841 = vperm.xlu0 %2882, %v314_v50  }
  0xed   :  { %353 = vrot.lane.b32.xlu1 %v2559_v53, %s2995_s19 }
  0xee   :  { %2884 = vset.pattern.permute.xlu1 %v2998_v57 }
  0xef   :  { %1134 = vrot.lane.b32.xlu0 %v1133_v55, %s2999_s25 }
  0xf0   :  { %2886 = vset.pattern.permute.xlu0 %v2998_v57  ;;  %v3240_v57 = vsub.s32 0, %v3206_v61 }
  0xf1   :  { %856 = vrot.lane.b32.xlu1 %v855_v56, %s2999_s25 }
  0xf3   :  { %668 = vperm.xlu0 %2886, %v314_v50  }
  0xf5   :  { %663 = vperm.xlu1 %2884, %v2734_v42  }
  0xf7   :  { %2888 = vset.pattern.permute.xlu0 %v3000_v58 }
  0xf8   :  { %1054 = vperm.xlu0 %2888, %v314_v50  }
  0xf9   :  { %2885 = vset.pattern.permute.xlu1 %v3000_v58 }
  0xfa   :  { %1059 = vperm.xlu1 %2885, %v2737_v48  }
  0xfc   :  { %2889 = vset.pattern.permute.xlu0 %v2993_v24 }
  0xfe   :  { %2887 = vset.pattern.permute.xlu1 %v3001_v59 }
  0xff   :  { %803 = vperm.xlu1 %2887, %v314_v50  }
 0x103   :  { %2890 = vset.pattern.permute.xlu1 %v2994_v25 }
 0x158   :  { %v332_v3 = vpop.permute.xlu1 %331  ;;  %v406_v5 = vpop.permute.xlu0 %405 }
 0x159   :  { %v413_v6 = vadd.f32 %v411_v1, %v406_v5  ;;  %v339_v18 = vadd.f32 %v337_v7, %v332_v3  ;;  %v3245_v3 = vsub.s32 2, %v3206_v61 }
 0x15b   :  { %vm415_vm4 = vcmp.ge.f32.partialorder %v413_v6, 0.0  ;;  %v417_v8 = vmul.f32 0.2, %v413_v6  ;;  %v343_v32 = vmul.f32 0.2, %v339_v18  ;;  %vm341_vm9 = vcmp.ge.f32.partialorder %v339_v18, 0.0 }
 0x15c   :  { %v327_v9 = vpop.permute.xlu1 %326  ;;  %v402_v10 = vpop.permute.xlu0 %401 }
 0x15d   :  { %v338_v11 = vadd.f32 %v337_v7, %v327_v9  ;;  %v412_v12 = vadd.f32 %v411_v1, %v402_v10  ;;  %v419_v13 = vsel %vm415_vm4, %v413_v6, %v417_v8  ;;  %v345_v45 = vsel %vm341_vm9, %v339_v18, %v343_v32 }
 0x15e   :  { %v3219_v15 = vadd.f32 %v428_v63, %v419_v13  ;;  %v674_v6 = vrot.slane %v3174_v43, %v3240_v57  ;;  %vm1139_vm4 = vcmask 253119   ;;  %v2581_v13 = vld [vmem:[%s3680_s1 + $0x20] sm:$0xff] }
 0x15f   :  { %v342_v16 = vmul.f32 0.2, %v338_v11  ;;  %vm414_vm6 = vcmp.ge.f32.partialorder %v412_v12, 0.0  ;;  %v416_v17 = vmul.f32 0.2, %v412_v12  ;;  %vm340_vm7 = vcmp.ge.f32.partialorder %v338_v11, 0.0 }
 0x160   :  { %v352_v19 = vpop.permute.xlu1 %351  ;;  %v438_v20 = vsel %vm437_vm5, %v3219_v15, -inf  ;;  %v3265_v32 = vrot.slane %v2581_v13, 1 }
 0x161   :  { %v344_v21 = vsel %vm340_vm7, %v338_v11, %v342_v16  ;;  %v1116_v22 = vpop.permute.xlu0 %1115  ;;  %439 = vmax.xlane.f32.xlu0 %v438_v20  ;;  %v418_v23 = vsel %vm414_vm6, %v412_v12, %v416_v17  ;;  %v1065_v11 = vrot.slane %v3174_v43, %v3245_v3  ;;  %v683_v12 = vld [vmem:[%s3680_s1] sm:$0xff]  ;;  %vm1143_vm7 = vcmask 252088  }
 0x162   :  { %v3224_v29 = vadd.f32 %v426_v0, %v418_v23  ;;  %v3228_v33 = vadd.f32 %v352_v19, %v344_v21  ;;  %v1123_v52 = vadd.f32 %v1121_v30, %v1116_v22  ;;  %v720_v23 = vsub.s32 1, %v3206_v61 }
 0x164   :  { %v1112_v34 = vpop.permute.xlu1 %1111  ;;  %v434_v35 = vsel %vm433_vm8, %v3224_v29, -inf  ;;  %v360_v47 = vsel %vm359_vm10, %v3228_v33, -inf  ;;  %v1127_v0 = vmul.f32 0.2, %v1123_v52  ;;  %vm1125_vm15 = vcmp.ge.f32.partialorder %v1123_v52, 0.0 }
 0x165   :  { %v1122_v36 = vadd.f32 %v1121_v30, %v1112_v34  ;;  %435 = vmax.xlane.f32.xlu1 %v434_v35  ;;  %v685_v30 = vrot.slane %v683_v12, 4 }
 0x166   :  { %v842_v39 = vpop.permute.xlu0 %841  ;;  %v1129_v10 = vsel %vm1125_vm15, %v1123_v52, %v1127_v0 }
 0x167   :  { %v848_v40 = vadd.f32 %v847_v38, %v842_v39  ;;  %v1126_v42 = vmul.f32 0.2, %v1122_v36  ;;  %vm1124_vm12 = vcmp.ge.f32.partialorder %v1122_v36, 0.0 }
 0x168   :  { %v354_v46 = vpop.permute.xlu1 %353 }
 0x169   :  { %v850_v48 = vmul.f32 0.2, %v848_v40  ;;  %v3235_v50 = vadd.f32 %v354_v46, %v345_v45  ;;  %361 = vmax.xlane.f32.xlu1 %v360_v47  ;;  %vm849_vm13 = vcmp.ge.f32.partialorder %v848_v40, 0.0  ;;  %v1128_v59 = vsel %vm1124_vm12, %v1122_v36, %v1126_v42 }
 0x16a   :  { %v1135_v53 = vpop.permute.xlu0 %1134  ;;  %vm689_vm12 = vcmask 97284   ;;  %v809_v45 = vrot.slane %v3174_v43, %v720_v23  ;;  %v2574_v43 = vld [vmem:[%s3680_s1 + $0x10] sm:$0xff] }
 0x16b   :  { %v851_v54 = vsel %vm849_vm13, %v848_v40, %v850_v48  ;;  %v364_v56 = vsel %vm363_vm11, %v3235_v50, -inf  ;;  %v3247_v5 = vadd.f32 %v1135_v53, %v1128_v59  ;;  %v3260_v16 = vadd.f32 %v1135_v53, %v1129_v10 }
 0x16c   :  { %v857_v60 = vpop.permute.xlu1 %856  ;;  %365 = vmax.xlane.f32.xlu0 %v364_v56  ;;  %vm3694_vm13 = vcmask 97287  }
 0x16d   :  { %v3242_v63 = vadd.f32 %v857_v60, %v851_v54  ;;  %v1140_v19 = vsel %vm1139_vm4, %v3247_v5, -inf  ;;  %v1144_v36 = vsel %vm1143_vm7, %v3260_v16, -inf }
 0x16e   :  { %v669_v1 = vpop.permute.xlu0 %668 }
 0x16f   :  { %v861_v7 = vsel %vm860_vm14, %v3242_v63, -inf  ;;  %v676_v20 = vadd.f32 %v674_v6, %v669_v1 }
 0x170   :  { %v664_v8 = vpop.permute.xlu1 %663  ;;  %862 = vmax.xlane.f32.xlu1 %v861_v7 }
 0x171   :  { %v675_v9 = vadd.f32 %v674_v6, %v664_v8  ;;  %v680_v39 = vmul.f32 0.2, %v676_v20  ;;  %vm678_vm15 = vcmp.ge.f32.partialorder %v676_v20, 0.0  ;;  %v817_v6 = vrot.slane %v2574_v43, 6 }
 0x173   :  { %vm677_vm6 = vcmp.ge.f32.partialorder %v675_v9, 0.0  ;;  %v679_v17 = vmul.f32 0.2, %v675_v9  ;;  %v1055_v18 = vpop.permute.xlu0 %1054  ;;  %v682_v59 = vsel %vm678_vm15, %v676_v20, %v680_v39  ;;  %vm833_vm15 = vcmask 94208  }
 0x174   :  { %v1066_v21 = vadd.f32 %v1065_v11, %v1055_v18  ;;  %1141 = vmax.xlane.f32.xlu1 %v1140_v19  ;;  %v3288_v1 = vadd.f32 %v685_v30, %v682_v59 }
 0x175   :  { %v1060_v22 = vpop.permute.xlu1 %1059  ;;  %v681_v27 = vsel %vm677_vm6, %v675_v9, %v679_v17  ;;  %vm3693_vm6 = vcmask 96256  }
 0x176   :  { %vm1068_vm9 = vcmp.ge.f32.partialorder %v1066_v21, 0.0  ;;  %v1070_v34 = vmul.f32 0.2, %v1066_v21  ;;  %v1067_v35 = vadd.f32 %v1065_v11, %v1060_v22  ;;  %v3269_v38 = vadd.f32 %v685_v30, %v681_v27 }
 0x178   :  { %vm1069_vm14 = vcmp.ge.f32.partialorder %v1067_v35, 0.0  ;;  %v1071_v40 = vmul.f32 0.2, %v1067_v35  ;;  %1145 = vmax.xlane.f32.xlu1 %v1144_v36  ;;  %v1072_v42 = vsel %vm1068_vm9, %v1066_v21, %v1070_v34  ;;  %v690_v53 = vsel %vm689_vm12, %v3269_v38, -inf }
 0x179   :  { %v3275_v46 = vadd.f32 %v3265_v32, %v1072_v42  ;;  %vm693_vm12 = vcmask 91136  }
 0x17a   :  { %v804_v47 = vpop.permute.xlu1 %803  ;;  %v1073_v48 = vsel %vm1069_vm14, %v1067_v35, %v1071_v40  ;;  %v694_v8 = vsel %vm693_vm12, %v3288_v1, -inf  ;;  %vm820_vm14 = vcmask 96258   ;;  %vm722_vm12 = vcmask 97280  }
 0x17b   :  { %v810_v52 = vadd.f32 %v809_v45, %v804_v47  ;;  %v1082_v54 = vsel %vm3694_vm13, %v3275_v46, -inf  ;;  %v3281_v56 = vadd.f32 %v3265_v32, %v1073_v48  ;;  %vm3696_vm13 = vcmask 1045504  }
 0x17c   :  { %691 = vmax.xlane.f32.xlu1 %v690_v53  ;;  %1083 = vmax.xlane.f32.xlu0 %v1082_v54 }
 0x17d   :  { %vm811_vm9 = vcmp.ge.f32.partialorder %v810_v52, 0.0  ;;  %v812_v60 = vmul.f32 0.2, %v810_v52  ;;  %v1086_v0 = vsel %vm3693_vm6, %v3281_v56, -inf  ;;  %vm3695_vm6 = vcmask 64512  }
 0x17f   :  { %v813_v7 = vsel %vm811_vm9, %v810_v52, %v812_v60  ;;  %vm711_vm9 = vcmask 95232  }
 0x180   :  { %1087 = vmax.xlane.f32.xlu1 %v1086_v0  ;;  %v819_v9 = vadd.f32 %v817_v6, %v813_v7 }
 0x182   :  { %v821_v10 = vsel %vm820_vm14, %v819_v9, -inf  ;;  %vm3692_vm14 = vcmask 35840  }
 0x184   :  { %695 = vmax.xlane.f32.xlu1 %v694_v8 }
 0x188   :  { %822 = vmax.xlane.f32.xlu1 %v821_v10 }
 0x1ea   :  { %v440_v11 = vpop.xlane.xlu0 %439 }
 0x1eb   :  { %v445_v12 = vsub.f32 %v3219_v15, %v440_v11 }
 0x1ed   :  { %v448_v13 = vmul.f32 1.442695, %v445_v12 }
 0x1ee   :  { %v436_v17 = vpop.xlane.xlu1 %435 }
 0x1ef   :  { %2898 = vpow2.f32 %v448_v13  ;;  %v444_v18 = vsub.f32 %v3224_v29, %v436_v17 }
 0x1f1   :  { %v446_v19 = vmul.f32 1.442695, %v444_v18 }
 0x1f2   :  { %v362_v20 = vpop.xlane.xlu1 %361 }
 0x1f3   :  { %2900 = vpow2.f32 %v446_v19  ;;  %v370_v21 = vsub.f32 %v3228_v33, %v362_v20 }
 0x1f5   :  { %v372_v22 = vmul.f32 1.442695, %v370_v21  ;;  %v366_v27 = vpop.xlane.xlu0 %365 }
 0x1f6   :  { %v371_v30 = vsub.f32 %v3235_v50, %v366_v27 }
 0x1f7   :  { %2902 = vpow2.f32 %v372_v22 }
 0x1f8   :  { %v374_v34 = vmul.f32 1.442695, %v371_v30 }
 0x1f9   :  { %v863_v35 = vpop.xlane.xlu1 %862 }
 0x1fa   :  { %2904 = vpow2.f32 %v374_v34  ;;  %v866_v15 = vsub.f32 %v3242_v63, %v863_v35  ;;  %v2575_v35 = vld [vmem:[%s3681_s2 + $0x10] sm:$0xff] }
 0x1fc   :  { %v2899_v36 = vpop.eup %2898  ;;  %v867_v39 = vmul.f32 1.442695, %v866_v15 }
 0x1fd   :  { %v1142_v40 = vpop.xlane.xlu1 %1141  ;;  %454 = vrot.lane.b32.xlu1 %v2899_v36, %s3002_s13 }
 0x1fe   :  { %2906 = vpow2.f32 %v867_v39  ;;  %v1149_v29 = vsub.f32 %v3247_v5, %v1142_v40  ;;  %v697_v40 = vld [vmem:[%s3681_s2] sm:$0xff] }
 0x200   :  { %v2901_v33 = vpop.eup %2900  ;;  %v1151_v42 = vmul.f32 1.442695, %v1149_v29 }
 0x201   :  { %v1146_v45 = vpop.xlane.xlu1 %1145  ;;  %452 = vrot.lane.b32.xlu0 %v2901_v33, %s3002_s13  ;;  %v3321_v33 = vld [vmem:[%s3681_s2 + $0x20] sm:$0xff] }
 0x202   :  { %v1150_v50 = vsub.f32 %v3260_v16, %v1146_v45  ;;  %2908 = vpow2.f32 %v1151_v42 }
 0x204   :  { %v2903_v47 = vpop.eup %2902  ;;  %v1153_v48 = vmul.f32 1.442695, %v1150_v50 }
 0x205   :  { %v692_v63 = vpop.xlane.xlu1 %691  ;;  %378 = vrot.lane.b32.xlu1 %v2903_v47, %s3003_s14  ;;  %v1084_v60 = vpop.xlane.xlu0 %1083 }
 0x206   :  { %2910 = vpow2.f32 %v1153_v48  ;;  %v698_v10 = vsub.f32 %v3269_v38, %v692_v63  ;;  %v1091_v13 = vsub.f32 %v3275_v46, %v1084_v60 }
 0x207   :  { %v2905_v52 = vpop.eup %2904 }
 0x208   :  { %380 = vrot.lane.b32.xlu0 %v2905_v52, %s3003_s14  ;;  %v700_v21 = vmul.f32 1.442695, %v698_v10  ;;  %v2565_v52 = vld [vmem:[%s3681_s2 + $0x58] sm:$0xf]  ;;  %v475_v10 = vrot.slane %v3164_v31, 2 }
 0x209   :  { %v1088_v53 = vpop.xlane.xlu1 %1087 }
 0x20a   :  { %v1092_v16 = vsub.f32 %v3281_v56, %v1088_v53  ;;  %v1093_v56 = vmul.f32 1.442695, %v1091_v13 }
 0x20b   :  { %v2907_v5 = vpop.eup %2906 }
 0x20c   :  { %v870_v54 = vrot.slane %v2907_v5, 2  ;;  %v1095_v17 = vmul.f32 1.442695, %v1092_v16  ;;  %v2561_v16 = vld [vmem:[%s3681_s2 + $0x48] sm:$0xf] }
 0x20d   :  { %v696_v59 = vpop.xlane.xlu1 %695 }
 0x20e   :  { %871 = vrot.lane.b32.xlu1 %v870_v54, %s3004_s15  ;;  %v699_v6 = vsub.f32 %v3288_v1, %v696_v59  ;;  %2912 = vpow2.f32 %v1095_v17 }
 0x20f   :  { %v2909_v43 = vpop.eup %2908 }
 0x210   :  { %v1157_v11 = vrot.slane %v2909_v43, 7  ;;  %v702_v19 = vmul.f32 1.442695, %v699_v6  ;;  %v3346_v43 = vld [vmem:[%s3681_s2 + $0x50] sm:$0xff] }
 0x211   :  { %v823_v0 = vpop.xlane.xlu1 %822 }
 0x212   :  { %v826_v7 = vsub.f32 %v819_v9, %v823_v0 }
 0x213   :  { %v2911_v8 = vpop.eup %2910 }
 0x214   :  { %v1158_v12 = vrot.slane %v2911_v8, 7  ;;  %v827_v18 = vmul.f32 1.442695, %v826_v7 }
 0x216   :  { %v1159_v20 = vsel %vm883_vm3, %v1157_v11, %v1158_v12  ;;  %2914 = vpow2.f32 %v827_v18  ;;  %v3367_v11 = vld [vmem:[%s3681_s2 + $0x40] sm:$0xff]  ;;  %v3381_v18 = vld [vmem:[%s3681_s2 + $0x30] sm:$0xff] }
 0x217   :  { %1160 = vrot.lane.b32.xlu0 %v1159_v20, %s3004_s15  ;;  %2916 = vpow2.f32 %v702_v19 }
 0x218   :  { %2918 = vpow2.f32 %v700_v21 }
 0x219   :  { %2920 = vpow2.f32 %v1093_v56 }
 0x21b   :  { %v2913_v1 = vpop.eup %2912 }
 0x21c   :  { %v1100_v30 = vrot.slane %v2913_v1, 7 }
 0x223   :  { %v2915_v38 = vpop.eup %2914 }
 0x224   :  { %v2917_v9 = vpop.eup %2916  ;;  %v830_v46 = vrot.slane %v2915_v38, 2 }
 0x225   :  { %v2919_v22 = vpop.eup %2918  ;;  %v707_v34 = vrot.slane %v2917_v9, 4 }
 0x226   :  { %v2921_v27 = vpop.eup %2920  ;;  %v706_v15 = vrot.slane %v2919_v22, 4  ;;  %v3312_v39 = vmul.f32 %v2575_v35, %v830_v46 }
 0x227   :  { %v1099_v36 = vrot.slane %v2921_v27, 7 }
 0x228   :  { %v708_v29 = vsel %vm3700_vm2, %v706_v15, %v707_v34  ;;  %v834_v45 = vsel %vm833_vm15, %v3312_v39, 0.0  ;;  %vm3691_vm15 = vcmask 44032  }
 0x229   :  { %v1101_v42 = vsel %vm883_vm3, %v1099_v36, %v1100_v30  ;;  %v3325_v50 = vmul.f32 %v708_v29, %v697_v40 }
 0x22a   :  { %v3328_v47 = vmul.f32 %v3321_v33, %v1101_v42 }
 0x22b   :  { %v712_v48 = vsel %vm711_vm9, %v3325_v50, 0.0  ;;  %vm460_vm9 = vcmask 39936  }
 0x22c   :  { %v1104_v63 = vsel %vm722_vm12, %v3328_v47, 0.0 }
 0x232   :  { %835 = vadd.xlane.f32.xlu1 %v834_v45 }
 0x236   :  { %713 = vadd.xlane.f32.xlu0 %v712_v48  ;;  %1105 = vadd.xlane.f32.xlu1 %v1104_v63 }
 0x26f   :  { %v455_v53 = vpop.permute.xlu1 %454 }
 0x270   :  { %v3336_v5 = vmul.f32 %v2565_v52, %v455_v53 }
 0x272   :  { %v465_v54 = vsel %vm3692_vm14, %v3336_v5, 0.0  ;;  %vm875_vm14 = vcmask 61440  }
 0x273   :  { %466 = vadd.xlane.f32.xlu0 %v465_v54  ;;  %v453_v59 = vpop.permute.xlu0 %452 }
 0x274   :  { %v458_v6 = vmul.f32 %v3346_v43, %v453_v59 }
 0x276   :  { %v461_v8 = vsel %vm460_vm9, %v458_v6, 0.0 }
 0x277   :  { %v379_v12 = vpop.permute.xlu1 %378 }
 0x278   :  { %v384_v31 = vmul.f32 %v3367_v11, %v379_v12 }
 0x27a   :  { %v381_v60 = vpop.permute.xlu0 %380 }
 0x27b   :  { %v3348_v0 = vmul.f32 %v2561_v16, %v381_v60 }
 0x27d   :  { %v391_v7 = vsel %vm3691_vm15, %v3348_v0, 0.0  ;;  %vm386_vm15 = vcmask 48128  }
 0x27e   :  { %392 = vadd.xlane.f32.xlu1 %v391_v7  ;;  %v387_v13 = vsel %vm386_vm15, %v384_v31, 0.0 }
 0x282   :  { %462 = vadd.xlane.f32.xlu1 %v461_v8 }
 0x289   :  { %967 = vrot.lane.b32.xlu0 %v3162_v28, %s3005_s30  ;;  %v1161_v19 = vpop.permute.xlu0 %1160 }
 0x28a   :  { %v3384_v20 = vmul.f32 %v3381_v18, %v1161_v19 }
 0x28c   :  { %v1164_v56 = vsel %vm3695_vm6, %v3384_v20, 0.0 }
 0x293   :  { %476 = vrot.lane.b32.xlu1 %v475_v10, %s3005_s30 }
 0x297   :  { %887 = vrot.lane.b32.xlu1 %v3177_v44, %s3006_s12  ;;  %v2577_v44 = vld [vmem:[%s3681_s2 + $0x60] sm:$0xff] }
 0x29b   :  { %965 = vrot.lane.b32.xlu1 %v3160_v26, %s3005_s30 }
 0x29f   :  { %1175 = vrot.lane.b32.xlu1 %v3172_v41, %s3007_s17  ;;  %v872_v41 = vpop.permute.xlu1 %871 }
 0x2a0   :  { %v3376_v17 = vmul.f32 %v2577_v44, %v872_v41 }
 0x2a2   :  { %v876_v21 = vsel %vm875_vm14, %v3376_v17, 0.0  ;;  %vm484_vm14 = vcmask 1044480  }
 0x2a8   :  { %388 = vadd.xlane.f32.xlu0 %v387_v13 }
 0x2bb   :  { %v836_v1 = vpop.xlane.xlu1 %835 }
 0x2bc   :  { %v837_v54 = vmax.f32 %v836_v1, 1e-16  ;;  %v2595_v1 = vld [vmem:[%s3682_s3 + $0x78] sm:$0xff] }
 0x2be   :  { %1253 = vrot.lane.b32.xlu0 %v3162_v28, %s3006_s12 }
 0x2bf   :  { %v714_v38 = vpop.xlane.xlu0 %713  ;;  %v3391_v9 = vpop.xlane.xlu1 %1105 }
 0x2c0   :  { %v715_v53 = vmax.f32 %v714_v38, 1e-16  ;;  %v2593_v38 = vld [vmem:[%s3682_s3 + $0x68] sm:$0xff] }
 0x2dd   :  { %877 = vadd.xlane.f32.xlu0 %v876_v21 }
 0x2e1   :  { %1165 = vadd.xlane.f32.xlu0 %v1164_v56 }
 0x2f7   :  { %1251 = vrot.lane.b32.xlu0 %v3160_v26, %s3006_s12 }
 0x2fc   :  { %v467_v22 = vpop.xlane.xlu0 %466 }
 0x2fd   :  { %v469_v46 = vmax.f32 %v467_v22, 1e-16  ;;  %v2590_v22 = vld [vmem:[%s3682_s3 + $0x50] sm:$0xff] }
 0x2ff   :  { %2922 = vrcp.f32 %v469_v46  ;;  %v2588_v46 = vld [vmem:[%s3682_s3 + $0x40] sm:$0xff] }
 0x300   :  { %v968_v45 = vpop.permute.xlu0 %967 }
 0x307   :  { %v393_v27 = vpop.xlane.xlu1 %392 }
 0x308   :  { %v395_v48 = vmax.f32 %v393_v27, 1e-16  ;;  %v2589_v27 = vld [vmem:[%s3682_s3 + $0x48] sm:$0xff] }
 0x30b   :  { %v463_v30 = vpop.xlane.xlu1 %462 }
 0x30c   :  { %v468_v34 = vmax.f32 %v463_v30, 1e-16  ;;  %v2923_v36 = vpop.eup %2922  ;;  %v2609_v30 = vld [vmem:[%s3684_s5 + $0x38] sm:$0xff] }
 0x30d   :  { %v473_v42 = vmul.f32 %v2923_v36, %v3336_v5 }
 0x30e   :  { %2924 = vrcp.f32 %v468_v34 }
 0x30f   :  { %v477_v35 = vpop.permute.xlu1 %476  ;;  %2926 = vrcp.f32 %v395_v48 }
 0x310   :  { %2738 = vmatprep.subr.msk.mxu1 %vm484_vm14, %v477_v35 }
 0x311   :  { %2739 = vmatpush3.msk.msra.mxu1 %vm484_vm14, %v477_v35  ;;  %v323_v35 = vld [vmem:[%s3685_s6] sm:$0xf] }
 0x312   :  { %2743 = vmatprep.subr.msk.mxu1 %vm3696_vm13, %v3168_v37  ;;  %v654_v36 = vrot.slane %v323_v35, %v3240_v57 }
 0x313   :  { %v888_v15 = vpop.permute.xlu1 %887 }
 0x314   :  { %2756 = vmatpush3.msra.mxu0 %v888_v15 }
 0x315   :  { %2767 = vmatprep.subr.mxu0 %v2990_v4 }
 0x31b   :  { %v2925_v40 = vpop.eup %2924 }
 0x31c   :  { %v472_v29 = vmul.f32 %v2925_v40, %v458_v6  ;;  %v2927_v5 = vpop.eup %2926 }
 0x31d   :  { %v399_v60 = vmul.f32 %v2927_v5, %v3348_v0 }
 0x31e   :  { %2740 = vmatprep.mubr.msk.f32.mxu1 %vm460_vm9, %v472_v29 }
 0x31f   :  { %2741 = vmatmul.mubr.msk.f32.vlgmr.msra.gmra.mxu1 %vm460_vm9, %v473_v42  ;;  %v721_v42 = vrot.slane %v323_v35, %v720_v23  ;;  %v2608_v23 = vld [vmem:[%s3684_s5 + $0x30] sm:$0xff] }
 0x320   :  { %2744 = vmatpush3.msk.msra.mxu1 %vm3696_vm13, %v3168_v37  ;;  %vm800_vm13 = vcmask 259072  }
 0x321   :  { %2748 = vmatprep.subr.mxu1 %v2990_v4 }
 0x331   :  { %v389_v63 = vpop.xlane.xlu0 %388 }
 0x332   :  { %v394_v52 = vmax.f32 %v389_v63, 1e-16 }
 0x334   :  { %2928 = vrcp.f32 %v394_v52 }
 0x335   :  { %2930 = vrcp.f32 %v715_v53  ;;  %v1254_v8 = vpop.permute.xlu0 %1253 }
 0x336   :  { %2932 = vrcp.f32 %v837_v54 }
 0x341   :  { %v2929_v59 = vpop.eup %2928 }
 0x342   :  { %v398_v16 = vmul.f32 %v2929_v59, %v384_v31  ;;  %v2931_v6 = vpop.eup %2930 }
 0x343   :  { %v717_v37 = vmul.f32 %v2931_v6, %v3325_v50  ;;  %v2933_v7 = vpop.eup %2932 }
 0x344   :  { %2745 = vmatprep.mubr.msk.f32.mxu1 %vm386_vm15, %v398_v16  ;;  %v839_v0 = vmul.f32 %v2933_v7, %v3312_v39 }
 0x345   :  { %2746 = vmatmul.mubr.msk.f32.vlgmr.msra.gmra.mxu1 %vm386_vm15, %v399_v60 }
 0x346   :  { %2749 = vmatpush3.msk.msra.mxu1 %vm3700_vm2, %v3162_v28  ;;  %2752 = vmatprep.mubr.msk.f32.mxu1 %vm3698_vm1, %v2990_v4  ;;  %v966_v28 = vpop.permute.xlu1 %965 }
 0x347   :  { %2750 = vmatprep.subr.mxu1 %v2990_v4 }
 0x348   :  { %2751 = vmatpush3.msra.mxu1 %v3160_v26  ;;  %v1107_v26 = vmax.f32 %v3391_v9, 1e-16  ;;  %v2591_v9 = vld [vmem:[%s3682_s3 + $0x58] sm:$0xff] }
 0x349   :  { %2760 = vmatprep.subr.mxu1 %v2990_v4  ;;  %2753 = vmatmul.mubr.msk.f32.vlgmr.msra.gmra.mxu1 %vm722_vm12, %v717_v37 }
 0x34a   :  { %2761 = vmatpush3.msk.msra.mxu1 %vm3700_vm2, %v968_v45  ;;  %2764 = vmatprep.mubr.msk.f32.mxu1 %vm3698_vm1, %v2990_v4  ;;  %2934 = vrcp.f32 %v1107_v26  ;;  %v1176_v21 = vpop.permute.xlu1 %1175 }
 0x34b   :  { %2762 = vmatprep.subr.mxu1 %v2990_v4 }
 0x34c   :  { %2763 = vmatpush3.msra.mxu1 %v966_v28  ;;  %v2607_v28 = vld [vmem:[%s3684_s5 + $0x28] sm:$0xff] }
 0x34d   :  { %2772 = vmatprep.subr.mxu1 %v2990_v4  ;;  %2765 = vmatmul.mubr.msk.f32.vlgmr.msra.gmra.mxu1 %vm722_vm12, %v839_v0 }
 0x34e   :  { %2773 = vmatpush3.msk.msra.mxu1 %vm3700_vm2, %v1254_v8  ;;  %2776 = vmatprep.mubr.msk.f32.mxu1 %vm3698_vm1, %v2990_v4  ;;  %v2606_v8 = vld [vmem:[%s3684_s5 + $0x20] sm:$0xff] }
 0x34f   :  { %2774 = vmatprep.subr.mxu1 %v2990_v4 }
 0x357   :  { %v2935_v12 = vpop.eup %2934 }
 0x358   :  { %v1109_v44 = vmul.f32 %v2935_v12, %v3328_v47 }
 0x366   :  { %v878_v50 = vpop.xlane.xlu0 %877 }
 0x367   :  { %v879_v10 = vmax.f32 %v878_v50, 1e-16 }
 0x369   :  { %2936 = vrcp.f32 %v879_v10  ;;  %v1048_v10 = vrot.slane %v323_v35, %v3245_v3 }
 0x36a   :  { %v1166_v39 = vpop.xlane.xlu0 %1165 }
 0x36b   :  { %v1167_v31 = vmax.f32 %v1166_v39, 1e-16 }
 0x36d   :  { %2938 = vrcp.f32 %v1167_v31 }
 0x36e   :  { %v1252_v13 = vpop.permute.xlu0 %1251 }
 0x36f   :  { %2775 = vmatpush3.msra.mxu1 %v1252_v13 }
 0x370   :  { %2777 = vmatmul.mubr.msk.f32.vlgmr.msra.gmra.mxu1 %vm722_vm12, %v1109_v44  ;;  %2779 = vmatprep.subr.mxu1 %v2990_v4  ;;  %v1334_v44 = vrot.slane %v323_v35, %v3217_v14 }
 0x371   :  { %2787 = vmatprep.mubr.msk.f32.mxu1 %vm3698_vm1, %v2990_v4 }
 0x376   :  { %v2937_v41 = vpop.eup %2936 }
 0x377   :  { %v881_v19 = vmul.f32 %v2937_v41, %v3376_v17  ;;  %v2594_v17 = vld [vmem:[%s3682_s3 + $0x70] sm:$0xff] }
 0x379   :  { %2758 = vmatmul.mubr.msk.f32.vlgmr.msra.gmra.mxu0 %vm3695_vm6, %v881_v19 }
 0x37a   :  { %v2939_v56 = vpop.eup %2938  ;;  %2768 = vmatpush3.msra.mxu0 %v1176_v21  ;;  %2769 = vmatprep.mubr.msk.f32.mxu0 %vm3698_vm1, %v2990_v4 }
 0x37b   :  { %v1169_v47 = vmul.f32 %v2939_v56, %v3384_v20  ;;  %1387 = vmatprep.subr.mxu0 %v2595_v1  ;;  %v2592_v20 = vld [vmem:[%s3682_s3 + $0x60] sm:$0xff] }
 0x37d   :  { %2770 = vmatmul.mubr.msk.f32.vlgmr.msra.gmra.mxu0 %vm3695_vm6, %v1169_v47  ;;  %vm660_vm6 = vcmask 257024  }
 0x37e   :  { %1427 = vmatprep.mubr.f32.mxu0 %v2990_v4  ;;  %1388 = vmatpush1.msra.mxu0 %v2594_v17 }
 0x37f   :  { %1389 = vmatprep.subr.mxu0 %v2593_v38 }
 0x380   :  { %1390 = vmatpush1.msra.mxu0 %v2592_v20  ;;  %v2600_v20 = vld [vmem:[%s3683_s4 + $0x8] sm:$0x7f] }
 0x381   :  { %1391 = vmatprep.subr.mxu0 %v2591_v9 }
 0x382   :  { %1392 = vmatpush1.msra.mxu0 %v2590_v22 }
 0x383   :  { %1393 = vmatprep.subr.mxu0 %v2589_v27 }
 0x384   :  { %1394 = vmatpush1.msra.mxu0 %v2588_v46 }
 0x385   :  { %2790 = vmatprep.subr.mxu0 %v2609_v30 }
 0x3df   :  { %v2742_v34 = vpop.f32.mrf.mxu1 }
 0x3e1   :  { %v553_v15 = vpop.f32.mrf.mxu1 }
 0x405   :  { %v2747_v40 = vpop.f32.mrf.mxu1 }
 0x406   :  { %v648_v29 = vadd.f32 %v2747_v40, %v2742_v34 }
 0x407   :  { %v642_v45 = vpop.f32.mrf.mxu1 }
 0x408   :  { %v656_v48 = vadd.f32 %v654_v36, %v648_v29  ;;  %v643_v63 = vadd.f32 %v642_v45, %v553_v15 }
 0x409   :  { %v795_v52 = vpop.f32.mrf.mxu1 }
 0x40a   :  { %v658_v53 = vmax.f32 %v656_v48, 0.0  ;;  %v655_v54 = vadd.f32 %v654_v36, %v643_v63  ;;  %v796_v5 = vadd.f32 %v795_v52, %v721_v42 }
 0x40b   :  { %v2754_v59 = vpop.f32.mrf.mxu1 }
 0x40c   :  { %661 = vst.msk [vmem:[#allocation2 + $0x8] sm:$0xf] %vm660_vm6, %v658_v53  ;;  %v657_v16 = vmax.f32 %v655_v54, 0.0  ;;  %v799_v60 = vmax.f32 %v796_v5, 0.0  ;;  %v2620_v59 = vld [vmem:[%s3680_s1 + $0x58] sm:$0xf] }
 0x40d   :  { %v1041_v6 = vpop.f32.mrf.mxu1 }
 0x40e   :  { %659 = vst.msk [vmem:[#allocation2] sm:$0xff] %vm3697_vm0, %v657_v16 }
 0x40f   :  { %801 = vst.msk [vmem:[#allocation2 + $0xc] sm:$0x3f] %vm800_vm13, %v799_v60  ;;  %v2766_v37 = vpop.f32.mrf.mxu1  ;;  %vm1051_vm13 = vcmask 258048   ;;  %v2619_v60 = vld [vmem:[%s3680_s1 + $0x50] sm:$0xff] }
 0x415   :  { %v1338_v7 = vld [vmem:[#allocation2] sm:$0xff] }
 0x416   :  { %2596 = vmatmul.mubr.msk.f32.vlgmr.msra.gmra.mxu0 %vm3697_vm0, %v1338_v7  ;;  %v1339_v0 = vld [vmem:[#allocation2 + $0x8] sm:$0xff] }
 0x417   :  { %1432 = vmatprep.mubr.f32.mxu0 %v2990_v4  ;;  %2791 = vmatpush3.msra.mxu0 %v2609_v30 }
 0x418   :  { %2792 = vmatprep.subr.mxu0 %v2608_v23 }
 0x419   :  { %2793 = vmatpush3.msra.mxu0 %v2608_v23 }
 0x41a   :  { %2597 = vmatmul.mubr.msk.f32.gmra.mxu0 %vm3697_vm0, %v1339_v0  ;;  %2794 = vmatprep.subr.mxu0 %v2607_v28 }
 0x41b   :  { %1438 = vmatprep.mubr.f32.mxu0 %v2990_v4  ;;  %2795 = vmatpush3.msra.mxu0 %v2607_v28 }
 0x41c   :  { %2796 = vmatprep.subr.mxu0 %v2606_v8 }
 0x41d   :  { %2797 = vmatpush3.msra.mxu0 %v2606_v8 }
 0x41e   :  { %2819 = vmatprep.subr.mxu0 %v2990_v4 }
 0x430   :  { %v1327_v26 = vpop.f32.mrf.mxu1 }
 0x432   :  { %v2778_v50 = vpop.f32.mrf.mxu1 }
 0x439   :  { %v960_v39 = vpop.f32.mrf.mxu0 }
 0x43a   :  { %v1042_v12 = vadd.f32 %v1041_v6, %v960_v39 }
 0x43b   :  { %v2759_v31 = vpop.f32.mrf.mxu0 }
 0x43c   :  { %v1049_v13 = vadd.f32 %v1048_v10, %v1042_v12 }
 0x43d   :  { %v1247_v41 = vpop.f32.mrf.mxu0 }
 0x43e   :  { %v1050_v19 = vmax.f32 %v1049_v13, 0.0  ;;  %v1328_v21 = vadd.f32 %v1327_v26, %v1247_v41 }
 0x43f   :  { %v2771_v56 = vpop.f32.mrf.mxu0 }
 0x440   :  { %1052 = vst.msk [vmem:[#allocation2 + $0x12] sm:$0x1f] %vm1051_vm13, %v1050_v19  ;;  %v1335_v47 = vadd.f32 %v1334_v44, %v1328_v21 }
 0x442   :  { %v1336_v1 = vmax.f32 %v1335_v47, 0.0 }
 0x444   :  { %1337 = vst.msk [vmem:[#allocation2 + $0x17] sm:$0xff] %vm3697_vm0, %v1336_v1 }
 0x44b   :  { %v1340_v17 = vld [vmem:[#allocation2 + $0x10] sm:$0xff]  ;;  %v1341_v38 = vld [vmem:[#allocation2 + $0x18] sm:$0xff] }
 0x44c   :  { %2598 = vmatmul.mubr.msk.f32.gmra.mxu0 %vm3697_vm0, %v1340_v17  ;;  %2780 = vmatpush3.xpose.msk.msra.mxu1 %vm3697_vm0, %v1341_v38 }
 0x44d   :  { %1444 = vmatprep.mubr.f32.mxu0 %v2990_v4  ;;  %2781 = vmatprep.subr.mxu1 %v2990_v4 }
 0x450   :  { %2599 = vmatmul.mubr.msk.f32.gmra.mxu0 %vm3697_vm0, %v1341_v38  ;;  %2782 = vmatpush3.xpose.msk.msra.mxu1 %vm3697_vm0, %v1340_v17 }
 0x451   :  { %2798 = vmatprep.mubr.msk.f32.mxu0 %vm3697_vm0, %v1338_v7  ;;  %2783 = vmatprep.subr.mxu1 %v2990_v4 }
 0x454   :  { %2784 = vmatpush3.xpose.msk.msra.mxu1 %vm3697_vm0, %v1339_v0  ;;  %2799 = vmatmul.mubr.msk.f32.vlgmr.msra.gmra.mxu0 %vm3697_vm0, %v1339_v0 }
 0x455   :  { %2801 = vmatprep.mubr.msk.f32.mxu0 %vm3697_vm0, %v1340_v17  ;;  %2785 = vmatprep.subr.mxu1 %v2990_v4 }
 0x458   :  { %2786 = vmatpush3.xpose.msk.msra.mxu1 %vm3697_vm0, %v1338_v7  ;;  %2802 = vmatmul.mubr.msk.f32.gmra.mxu0 %vm3697_vm0, %v1341_v38 }
 0x459   :  { %2823 = vmatprep.mubr.msk.f32.mxu0 %vm3698_vm1, %v2990_v4 }
 0x45b   :  { %2788 = vmatmul.mubr.msk.f32.vlgmr.msra.gmra.mxu1 %vm3697_vm0, %v2600_v20 }
 0x4d6   :  { %v3511_v9 = vpop.f32.mrf.mxu0 }
 0x4d8   :  { %v1431_v22 = vpop.f32.mrf.mxu0 }
 0x4da   :  { %v3513_v27 = vpop.f32.mrf.mxu0 }
 0x4dc   :  { %v1436_v46 = vpop.f32.mrf.mxu0 }
 0x4dd   :  { %v1843_v35 = vrot.slane %v1436_v46, 4 }
 0x50c   :  { %v1440_v30 = vpop.f32.mrf.mxu0 }
 0x50d   :  { %v2049_v40 = vrot.slane %v1440_v30, 7 }
 0x50e   :  { %v3515_v34 = vpop.f32.mrf.mxu0 }
 0x50f   :  { %v1844_v15 = vrot.slane %v3515_v34, 4 }
 0x510   :  { %v1446_v36 = vpop.f32.mrf.mxu0 }
 0x511   :  { %v2050_v29 = vrot.slane %v1446_v36, 7  ;;  %v3519_v42 = vsel %vm3700_vm2, %v1843_v35, %v1844_v15 }
 0x512   :  { %v1448_v45 = vpop.f32.mrf.mxu0 }
 0x513   :  { %v3522_v48 = vsel %vm883_vm3, %v2049_v40, %v2050_v29 }
 0x514   :  { %v2800_v63 = vpop.f32.mrf.mxu0 }
 0x515   :  { %1624 = vperm.xlu1 %2890, %v2800_v63   ;;  %1692 = vperm.xlu0 %2889, %v2800_v63  }
 0x516   :  { %v1596_v52 = vpop.f32.mrf.mxu0 }
 0x518   :  { %v2803_v53 = vpop.f32.mrf.mxu0 }
 0x519   :  { %2891 = vset.pattern.permute.xlu1 %v2993_v24  ;;  %2894 = vset.pattern.permute.xlu0 %v2996_v49  ;;  %v2616_v24 = vld [vmem:[%s3680_s1 + $0x48] sm:$0xf] }
 0x51a   :  { %1688 = vperm.xlu1 %2891, %v1596_v52   ;;  %v1606_v54 = vpop.f32.mrf.mxu0 }
 0x51b   :  { %1992 = vperm.xlu0 %2894, %v1606_v54   ;;  %v1521_v5 = vpop.f32.mrf.mxu1 }
 0x51c   :  { %v1698_v6 = vrot.slane %v1521_v5, %v410_v62  ;;  %v2002_v62 = vrot.slane %v1521_v5, %v3217_v14  ;;  %v1950_v61 = vrot.slane %v1521_v5, %v3245_v3 }
 0x51d   :  { %v2789_v16 = vpop.f32.mrf.mxu1 }
 0x51e   :  { %2892 = vset.pattern.permute.xlu1 %v2994_v25  ;;  %v2615_v25 = vld [vmem:[%s3680_s1 + $0x40] sm:$0xff]  ;;  %s3008_s1 = smov [#allocation3]  }
 0x51f   :  { %1619 = vperm.xlu1 %2892, %v1596_v52   ;;  %1713 = vrot.lane.b32.xlu0 %v2620_v59, %s2992_s16 }
 0x520   :  { %2896 = vset.pattern.permute.xlu0 %v3000_v58 }
 0x523   :  { %2893 = vset.pattern.permute.xlu1 %v2996_v49  ;;  %1645 = vrot.lane.b32.xlu0 %v2616_v24, %s2995_s19 }
 0x524   :  { %1996 = vperm.xlu1 %2893, %v2803_v53  }
 0x527   :  { %1939 = vperm.xlu0 %2896, %v1606_v54  }
 0x528   :  { %1711 = vrot.lane.b32.xlu1 %v2619_v60, %s2992_s16  ;;  %s2537_s16 = sshll.u32 %s3008_s1, 4  ;;  %s2538_s16 = int_to_ptr.vmem [resolvable:$true] %s2537_s16 }
 0x529   :  { %2895 = vset.pattern.permute.xlu1 %v3000_v58  ;;  %p2973_p1 = scmp.lt.s32.totalorder %s2538_s16, %s2538_s16 }
 0x52b   :  { %2897 = vset.pattern.permute.xlu0 %v2996_v49  ;;  %v1630_v49 = vrot.slane %v1521_v5, %v336_v2 }
 0x52c   :  { %1643 = vrot.lane.b32.xlu1 %v2615_v25, %s2995_s19 }
 0x530   :  { %2014 = vrot.lane.b32.xlu1 %v1133_v55, %s2999_s25 }
 0x534   :  { %1944 = vperm.xlu1 %2895, %v2803_v53  }
 0x590   :  { %v1625_v37 = vpop.permute.xlu1 %1624  ;;  %v1693_v7 = vpop.permute.xlu0 %1692 }
 0x591   :  { %v1700_v23 = vadd.f32 %v1698_v6, %v1693_v7  ;;  %v1632_v55 = vadd.f32 %v1630_v49, %v1625_v37 }
 0x593   :  { %v1704_v0 = vmul.f32 0.2, %v1700_v23  ;;  %vm1702_vm6 = vcmp.ge.f32.partialorder %v1700_v23, 0.0  ;;  %v1636_v41 = vmul.f32 0.2, %v1632_v55  ;;  %vm1634_vm0 = vcmp.ge.f32.partialorder %v1632_v55, 0.0 }
 0x595   :  { %v1689_v28 = vpop.permute.xlu1 %1688  ;;  %v1706_v50 = vsel %vm1702_vm6, %v1700_v23, %v1704_v0  ;;  %v1638_v20 = vsel %vm1634_vm0, %v1632_v55, %v1636_v41 }
 0x596   :  { %v1993_v8 = vpop.permute.xlu0 %1992  ;;  %v1699_v10 = vadd.f32 %v1698_v6, %v1689_v28 }
 0x597   :  { %v2003_v2 = vadd.f32 %v2002_v62, %v1993_v8 }
 0x598   :  { %v1703_v31 = vmul.f32 0.2, %v1699_v10  ;;  %vm1701_vm13 = vcmp.ge.f32.partialorder %v1699_v10, 0.0 }
 0x599   :  { %v2007_v30 = vmul.f32 0.2, %v2003_v2  ;;  %vm2005_vm1 = vcmp.ge.f32.partialorder %v2003_v2, 0.0 }
 0x59a   :  { %v1620_v58 = vpop.permute.xlu1 %1619  ;;  %v1714_v26 = vpop.permute.xlu0 %1713  ;;  %v1705_v17 = vsel %vm1701_vm13, %v1699_v10, %v1703_v31 }
 0x59b   :  { %v1718_v51 = vadd.f32 %v1714_v26, %v1706_v50  ;;  %v1631_v13 = vadd.f32 %v1630_v49, %v1620_v58  ;;  %v2009_v52 = vsel %vm2005_vm1, %v2003_v2, %v2007_v30  ;;  %vm3702_vm1 = vcmask 96256  }
 0x59c   :  { %v1756_v30 = vrot.slane %v3515_v34, 2  ;;  %v2622_v34 = vld [vmem:[%s3681_s2 + $0x58] sm:$0xf] }
 0x59d   :  { %v1722_v39 = vsel %vm437_vm5, %v1718_v51, -inf  ;;  %v1635_v21 = vmul.f32 0.2, %v1631_v13  ;;  %vm1633_vm5 = vcmp.ge.f32.partialorder %v1631_v13, 0.0 }
 0x59e   :  { %v1646_v12 = vpop.permute.xlu0 %1645  ;;  %1723 = vmax.xlane.f32.xlu0 %v1722_v39 }
 0x59f   :  { %v1997_v44 = vpop.permute.xlu1 %1996  ;;  %v1650_v22 = vadd.f32 %v1646_v12, %v1638_v20  ;;  %v1637_v40 = vsel %vm1633_vm5, %v1631_v13, %v1635_v21 }
 0x5a0   :  { %v2004_v56 = vadd.f32 %v2002_v62, %v1997_v44 }
 0x5a1   :  { %v1654_v29 = vsel %vm363_vm11, %v1650_v22, -inf  ;;  %vm3706_vm11 = vcmask 64512  }
 0x5a2   :  { %v1940_v19 = vpop.permute.xlu0 %1939  ;;  %v2008_v35 = vmul.f32 0.2, %v2004_v56  ;;  %vm2006_vm2 = vcmp.ge.f32.partialorder %v2004_v56, 0.0 }
 0x5a3   :  { %v1951_v47 = vadd.f32 %v1950_v61, %v1940_v19  ;;  %v1712_v1 = vpop.permute.xlu1 %1711 }
 0x5a4   :  { %v1717_v38 = vadd.f32 %v1712_v1, %v1705_v17  ;;  %v2010_v53 = vsel %vm2006_vm2, %v2004_v56, %v2008_v35  ;;  %vm3703_vm2 = vcmask 35840  }
 0x5a5   :  { %v1955_v15 = vmul.f32 0.2, %v1951_v47  ;;  %vm1953_vm6 = vcmp.ge.f32.partialorder %v1951_v47, 0.0 }
 0x5a6   :  { %v1719_v46 = vsel %vm433_vm8, %v1717_v38, -inf  ;;  %vm3701_vm8 = vcmask 97287  }
 0x5a7   :  { %v1644_v36 = vpop.permute.xlu1 %1643  ;;  %1720 = vmax.xlane.f32.xlu1 %v1719_v46  ;;  %v1957_v54 = vsel %vm1953_vm6, %v1951_v47, %v1955_v15  ;;  %vm2529_vm6 = vcmask 9216  }
 0x5a8   :  { %v1649_v3 = vadd.f32 %v1644_v36, %v1637_v40  ;;  %v1963_v60 = vadd.f32 %v1957_v54, %v3265_v32 }
 0x5aa   :  { %v1651_v45 = vsel %vm359_vm10, %v1649_v3, -inf  ;;  %v1965_v7 = vsel %vm3701_vm8, %v1963_v60, -inf  ;;  %vm3705_vm10 = vcmask 1045504  }
 0x5ab   :  { %v2015_v63 = vpop.permute.xlu1 %2014  ;;  %1655 = vmax.xlane.f32.xlu1 %v1654_v29  ;;  %1652 = vmax.xlane.f32.xlu0 %v1651_v45 }
 0x5ac   :  { %v2017_v5 = vadd.f32 %v2015_v63, %v2009_v52  ;;  %v2018_v59 = vadd.f32 %v2015_v63, %v2010_v53 }
 0x5ae   :  { %v2022_v16 = vsel %vm1143_vm7, %v2018_v59, -inf  ;;  %v2019_v24 = vsel %vm1139_vm4, %v2017_v5, -inf  ;;  %vm3707_vm4 = vcmask 1043456   ;;  %vm3708_vm7 = vmmov 0  }
 0x5af   :  { %v1945_v25 = vpop.permute.xlu1 %1944  ;;  %2023 = vmax.xlane.f32.xlu1 %v2022_v16  ;;  %2020 = vmax.xlane.f32.xlu0 %v2019_v24 }
 0x5b0   :  { %v1952_v6 = vadd.f32 %v1950_v61, %v1945_v25  ;;  %v2618_v25 = vld [vmem:[%s3681_s2 + $0x48] sm:$0xf] }
 0x5b2   :  { %vm1954_vm0 = vcmp.ge.f32.partialorder %v1952_v6, 0.0  ;;  %v1956_v37 = vmul.f32 0.2, %v1952_v6 }
 0x5b3   :  { %1966 = vmax.xlane.f32.xlu0 %v1965_v7 }
 0x5b4   :  { %v1958_v23 = vsel %vm1954_vm0, %v1952_v6, %v1956_v37 }
 0x5b5   :  { %v1964_v28 = vadd.f32 %v1958_v23, %v3265_v32 }
 0x5b7   :  { %v1968_v0 = vsel %vm3702_vm1, %v1964_v28, -inf }
 0x5b8   :  { %1969 = vmax.xlane.f32.xlu1 %v1968_v0 }
 0x627   :  { %v1724_v8 = vpop.xlane.xlu0 %1723 }
 0x628   :  { %v1728_v49 = vsub.f32 %v1718_v51, %v1724_v8 }
 0x62a   :  { %v1731_v58 = vmul.f32 1.442695, %v1728_v49 }
 0x62c   :  { %2940 = vpow2.f32 %v1731_v58 }
 0x630   :  { %v1721_v26 = vpop.xlane.xlu1 %1720 }
 0x631   :  { %v1727_v50 = vsub.f32 %v1717_v38, %v1721_v26 }
 0x633   :  { %v1729_v10 = vmul.f32 1.442695, %v1727_v50 }
 0x634   :  { %v1656_v55 = vpop.xlane.xlu1 %1655  ;;  %v1653_v39 = vpop.xlane.xlu0 %1652 }
 0x635   :  { %2942 = vpow2.f32 %v1729_v10  ;;  %v1660_v62 = vsub.f32 %v1650_v22, %v1656_v55  ;;  %v1659_v12 = vsub.f32 %v1649_v3, %v1653_v39 }
 0x637   :  { %v1663_v31 = vmul.f32 1.442695, %v1660_v62  ;;  %v1661_v13 = vmul.f32 1.442695, %v1659_v12 }
 0x638   :  { %v2024_v44 = vpop.xlane.xlu1 %2023  ;;  %v2021_v41 = vpop.xlane.xlu0 %2020 }
 0x639   :  { %v2941_v32 = vpop.eup %2940  ;;  %2944 = vpow2.f32 %v1663_v31  ;;  %v2027_v61 = vsub.f32 %v2018_v59, %v2024_v44  ;;  %v2026_v2 = vsub.f32 %v2017_v5, %v2021_v41 }
 0x63a   :  { %2946 = vpow2.f32 %v1661_v13  ;;  %1737 = vrot.lane.b32.xlu1 %v2941_v32, %s3002_s13 }
 0x63b   :  { %v2030_v51 = vmul.f32 1.442695, %v2027_v61  ;;  %v2028_v19 = vmul.f32 1.442695, %v2026_v2 }
 0x63c   :  { %v1967_v35 = vpop.xlane.xlu0 %1966 }
 0x63d   :  { %2948 = vpow2.f32 %v2030_v51  ;;  %v1972_v36 = vsub.f32 %v1963_v60, %v1967_v35 }
 0x63e   :  { %2950 = vpow2.f32 %v2028_v19 }
 0x63f   :  { %v1974_v3 = vmul.f32 1.442695, %v1972_v36 }
 0x641   :  { %v1970_v46 = vpop.xlane.xlu1 %1969 }
 0x642   :  { %v2943_v21 = vpop.eup %2942  ;;  %v1973_v15 = vsub.f32 %v1964_v28, %v1970_v46 }
 0x643   :  { %1735 = vrot.lane.b32.xlu0 %v2943_v21, %s3002_s13 }
 0x644   :  { %v1976_v40 = vmul.f32 1.442695, %v1973_v15 }
 0x646   :  { %v2945_v56 = vpop.eup %2944  ;;  %2952 = vpow2.f32 %v1976_v40 }
 0x647   :  { %v2947_v47 = vpop.eup %2946  ;;  %1669 = vrot.lane.b32.xlu0 %v2945_v56, %s3003_s14  ;;  %2954 = vpow2.f32 %v1974_v3 }
 0x648   :  { %1667 = vrot.lane.b32.xlu1 %v2947_v47, %s3003_s14 }
 0x64a   :  { %v2949_v1 = vpop.eup %2948 }
 0x64b   :  { %v2951_v17 = vpop.eup %2950  ;;  %v2035_v38 = vrot.slane %v2949_v1, 7 }
 0x64c   :  { %v2034_v20 = vrot.slane %v2951_v17, 7 }
 0x64e   :  { %v2036_v22 = vsel %vm883_vm3, %v2034_v20, %v2035_v38 }
 0x64f   :  { %2037 = vrot.lane.b32.xlu1 %v2036_v22, %s3004_s15 }
 0x653   :  { %1757 = vrot.lane.b32.xlu1 %v1756_v30, %s3005_s30  ;;  %v2953_v29 = vpop.eup %2952  ;;  %v2614_v30 = vld [vmem:[%s3685_s6 + $0x4] sm:$0xf] }
 0x654   :  { %v2955_v45 = vpop.eup %2954  ;;  %v1981_v63 = vrot.slane %v2953_v29, 7  ;;  %v1932_v15 = vrot.slane %v2614_v30, %v3240_v57  ;;  %v2216_v57 = vld [vmem:[%s3686_s7] sm:$0x3] }
 0x655   :  { %v1980_v52 = vrot.slane %v2955_v45, 7 }
 0x657   :  { %v1982_v53 = vsel %vm883_vm3, %v1980_v52, %v1981_v63  ;;  %vm3704_vm3 = vcmask 44032   ;;  %v2213_v63 = vrot.slane %v2614_v30, %v3217_v14 }
 0x658   :  { %v1984_v54 = vmul.f32 %v3321_v33, %v1982_v53 }
 0x65a   :  { %v1985_v5 = vsel %vm722_vm12, %v1984_v54, 0.0 }
 0x677   :  { %1986 = vadd.xlane.f32.xlu1 %v1985_v5 }
 0x6ac   :  { %v1738_v59 = vpop.permute.xlu1 %1737 }
 0x6ad   :  { %v1742_v16 = vmul.f32 %v2622_v34, %v1738_v59 }
 0x6af   :  { %v1746_v24 = vsel %vm3703_vm2, %v1742_v16, 0.0 }
 0x6b0   :  { %1747 = vadd.xlane.f32.xlu1 %v1746_v24  ;;  %v2374_v24 = vld [vmem:[%s3688_s9 + $0x38] sm:$0xff] }
 0x6b5   :  { %v1736_v60 = vpop.permute.xlu0 %1735 }
 0x6b6   :  { %v1741_v33 = vmul.f32 %v3346_v43, %v1736_v60  ;;  %v2293_v60 = vld [vmem:[%s3687_s8] sm:$0x3] }
 0x6b8   :  { %v1743_v0 = vsel %vm460_vm9, %v1741_v33, 0.0 }
 0x6b9   :  { %v1670_v6 = vpop.permute.xlu0 %1669 }
 0x6ba   :  { %v1674_v37 = vmul.f32 %v2618_v25, %v1670_v6  ;;  %v1668_v23 = vpop.permute.xlu1 %1667  ;;  %v2370_v25 = vld [vmem:[%s3688_s9 + $0x18] sm:$0xff]  ;;  %v2373_v6 = vld [vmem:[%s3688_s9 + $0x30] sm:$0xff] }
 0x6bb   :  { %v1673_v28 = vmul.f32 %v3367_v11, %v1668_v23  ;;  %v2367_v23 = vld [vmem:[%s3688_s9] sm:$0xff] }
 0x6bc   :  { %v1678_v7 = vsel %vm3704_vm3, %v1674_v37, 0.0 }
 0x6bd   :  { %1679 = vadd.xlane.f32.xlu0 %v1678_v7  ;;  %v1675_v58 = vsel %vm386_vm15, %v1673_v28, 0.0  ;;  %v2368_v7 = vld [vmem:[%s3688_s9 + $0x8] sm:$0xff] }
 0x6c1   :  { %v2038_v8 = vpop.permute.xlu1 %2037  ;;  %2052 = vrot.lane.b32.xlu1 %v3522_v48, %s3007_s17  ;;  %1744 = vadd.xlane.f32.xlu0 %v1743_v0 }
 0x6c2   :  { %v2040_v49 = vmul.f32 %v3381_v18, %v2038_v8 }
 0x6c4   :  { %v2041_v43 = vsel %vm3706_vm11, %v2040_v49, 0.0 }
 0x6c5   :  { %v1758_v26 = vpop.permute.xlu1 %1757  ;;  %2130 = vrot.lane.b32.xlu1 %v3511_v9, %s3006_s12  ;;  %1676 = vadd.xlane.f32.xlu0 %v1675_v58 }
 0x6c6   :  { %2804 = vmatprep.subr.msk.mxu1 %vm484_vm14, %v1758_v26 }
 0x6c7   :  { %2805 = vmatpush3.msk.msra.mxu1 %vm484_vm14, %v1758_v26  ;;  %vm3709_vm14 = vmmov %vm3705_vm10 }
 0x6c8   :  { %2809 = vmatprep.subr.msk.mxu1 %vm3705_vm10, %v3519_v42 }
 0x6c9   :  { %2042 = vadd.xlane.f32.xlu0 %v2041_v43  ;;  %v2641_v43 = vld [vmem:[%s3689_s10] ss:$0 sm:$0xff] }
 0x6df   :  { %2132 = vrot.lane.b32.xlu0 %v3513_v27, %s3006_s12 }
 0x700   :  { %v1987_v11 = vpop.xlane.xlu1 %1986 }
 0x701   :  { %v1988_v18 = vmax.f32 %v1987_v11, 1e-16 }
 0x703   :  { %2956 = vrcp.f32 %v1988_v18 }
 0x710   :  { %v2957_v41 = vpop.eup %2956 }
 0x711   :  { %v1990_v32 = vmul.f32 %v2957_v41, %v1984_v54 }
 0x739   :  { %v1748_v48 = vpop.xlane.xlu1 %1747 }
 0x73a   :  { %v1750_v9 = vmax.f32 %v1748_v48, 1e-16 }
 0x73c   :  { %2958 = vrcp.f32 %v1750_v9 }
 0x73d   :  { %v2053_v31 = vpop.permute.xlu1 %2052 }
 0x741   :  { %v2131_v61 = vpop.permute.xlu1 %2130 }
 0x746   :  { %v1680_v50 = vpop.xlane.xlu0 %1679 }
 0x747   :  { %v1682_v39 = vmax.f32 %v1680_v50, 1e-16 }
 0x749   :  { %v2959_v2 = vpop.eup %2958 }
 0x74a   :  { %v1745_v10 = vpop.xlane.xlu0 %1744  ;;  %v1754_v21 = vmul.f32 %v2959_v2, %v1742_v16 }
 0x74b   :  { %v1749_v55 = vmax.f32 %v1745_v10, 1e-16 }
 0x74d   :  { %2960 = vrcp.f32 %v1749_v55 }
 0x74e   :  { %v1677_v62 = vpop.xlane.xlu0 %1676  ;;  %2962 = vrcp.f32 %v1682_v39 }
 0x74f   :  { %v1681_v12 = vmax.f32 %v1677_v62, 1e-16 }
 0x751   :  { %2964 = vrcp.f32 %v1681_v12 }
 0x752   :  { %v2043_v13 = vpop.xlane.xlu0 %2042 }
 0x753   :  { %v2044_v44 = vmax.f32 %v2043_v13, 1e-16 }
 0x755   :  { %2966 = vrcp.f32 %v2044_v44 }
 0x756   :  { %v2133_v27 = vpop.permute.xlu0 %2132 }
 0x757   :  { %2820 = vmatpush3.msk.msra.mxu0 %vm3707_vm4, %v2133_v27 }
 0x758   :  { %2821 = vmatprep.subr.mxu0 %v2990_v4 }
 0x759   :  { %2822 = vmatpush3.msra.mxu0 %v2131_v61 }
 0x75a   :  { %v2961_v51 = vpop.eup %2960  ;;  %2824 = vmatmul.mubr.msk.f32.vlgmr.msra.gmra.mxu0 %vm722_vm12, %v1990_v32  ;;  %2833 = vmatprep.subr.mxu0 %v2990_v4 }
 0x75b   :  { %v1753_v19 = vmul.f32 %v2961_v51, %v1741_v33  ;;  %2835 = vmatprep.mubr.msk.f32.mxu0 %vm3708_vm7, %v2990_v4  ;;  %v2963_v56 = vpop.eup %2962  ;;  %v2372_v33 = vld [vmem:[%s3688_s9 + $0x28] sm:$0xff] }
 0x75c   :  { %v1686_v17 = vmul.f32 %v2963_v56, %v1674_v37  ;;  %v2369_v37 = vld [vmem:[%s3688_s9 + $0x10] sm:$0xff] }
 0x75d   :  { %2806 = vmatprep.mubr.msk.f32.mxu1 %vm460_vm9, %v1753_v19 }
 0x75e   :  { %v2965_v47 = vpop.eup %2964  ;;  %2807 = vmatmul.mubr.msk.f32.vlgmr.msra.gmra.mxu1 %vm460_vm9, %v1754_v21  ;;  %vm3710_vm9 = vmmov %vm3706_vm11 }
 0x75f   :  { %2810 = vmatpush3.msk.msra.mxu1 %vm3709_vm14, %v3519_v42  ;;  %v1685_v1 = vmul.f32 %v2965_v47, %v1673_v28  ;;  %vm3712_vm13 = vmmov %vm3710_vm9  ;;  %v2371_v28 = vld [vmem:[%s3688_s9 + $0x20] sm:$0xff]  ;;  %s2968_s9 = scalar_lea.vmem %s2538_s16, 32 }
 0x760   :  { %2814 = vmatprep.subr.mxu1 %v2990_v4  ;;  %p2969_p0 = scmp.ne.s32.totalorder %s2538_s16, %s2968_s9  ;;  %p2974_p2 = scmp.lt.s32.totalorder %s2968_s9, %s2968_s9 }
 0x761   :  { %2811 = vmatprep.mubr.msk.f32.mxu1 %vm386_vm15, %v1685_v1 }
 0x762   :  { %v2967_v38 = vpop.eup %2966  ;;  %2812 = vmatmul.mubr.msk.f32.vlgmr.msra.gmra.mxu1 %vm386_vm15, %v1686_v17  ;;  %vm3711_vm15 = vmmov %vm3707_vm4  ;;  %p2975_p3 = por %p2974_p2, %p2973_p1 }
 0x763   :  { %2815 = vmatpush3.msra.mxu1 %v2053_v31  ;;  %2816 = vmatprep.mubr.msk.f32.mxu1 %vm3708_vm7, %v2990_v4  ;;  %v2046_v20 = vmul.f32 %v2967_v38, %v2040_v49 }
 0x764   :  { %2826 = vmatprep.subr.mxu1 %v2990_v4  ;;  %p2976_p4 = pnand %p2975_p3, %p2969_p0 }
 0x766   :  { %2817 = vmatmul.mubr.msk.f32.vlgmr.msra.gmra.mxu1 %vm3710_vm9, %v2046_v20 }
 0x767   :  { %2830 = vmatprep.mubr.msk.f32.mxu1 %vm3708_vm7, %v2990_v4 }
 0x81a   :  { %v2206_v42 = vpop.f32.mrf.mxu0 }
 0x81c   :  { %v2825_v22 = vpop.f32.mrf.mxu0 }
 0x81e   :  { %v2808_v46 = vpop.f32.mrf.mxu1 }
 0x820   :  { %v1833_v35 = vpop.f32.mrf.mxu1 }
 0x822   :  { %v2813_v36 = vpop.f32.mrf.mxu1 }
 0x823   :  { %v1926_v40 = vadd.f32 %v2813_v36, %v2808_v46 }
 0x824   :  { %v1920_v3 = vpop.f32.mrf.mxu1 }
 0x825   :  { %v1934_v29 = vadd.f32 %v1932_v15, %v1926_v40  ;;  %v1921_v45 = vadd.f32 %v1920_v3, %v1833_v35 }
 0x826   :  { %v2124_v52 = vpop.f32.mrf.mxu1 }
 0x827   :  { %v1936_v53 = vmax.f32 %v1934_v29, 0.0  ;;  %v1933_v54 = vadd.f32 %v1932_v15, %v1921_v45  ;;  %v2207_v5 = vadd.f32 %v2206_v42, %v2124_v52 }
 0x828   :  { %v2818_v34 = vpop.f32.mrf.mxu1 }
 0x829   :  { %v1935_v59 = vmax.f32 %v1933_v54, 0.0  ;;  %v2214_v16 = vadd.f32 %v2213_v63, %v2207_v5  ;;  %2827 = vmatpush3.msk.msra.mxu1 %vm3711_vm15, %v1936_v53 }
 0x82a   :  { %2828 = vmatprep.subr.mxu1 %v2990_v4 }
 0x82b   :  { %v2215_v14 = vmax.f32 %v2214_v16, 0.0  ;;  %2829 = vmatpush3.msra.mxu1 %v1935_v59 }
 0x82c   :  { %2831 = vmatmul.mubr.msk.f32.vlgmr.msra.gmra.mxu1 %vm722_vm12, %v2216_v57  ;;  %2838 = vmatprep.subr.mxu1 %v2990_v4  ;;  %vm3713_vm12 = vcmask 261120  }
 0x82d   :  { %2834 = vmatpush3.msra.mxu0 %v2215_v14  ;;  %2839 = vmatpush3.msra.mxu1 %v2374_v24  ;;  %vm3714_vm5 = vmmov %vm3713_vm12 }
 0x82e   :  { %2836 = vmatmul.mubr.msk.f32.vlgmr.msra.gmra.mxu0 %vm3712_vm13, %v2293_v60  ;;  %2849 = vmatprep.subr.mxu0 %v2990_v4 }
 0x82f   :  { %2850 = vmatpush3.msra.mxu0 %v2370_v25  ;;  %2840 = vmatprep.subr.mxu1 %v2990_v4 }
 0x830   :  { %2851 = vmatprep.subr.mxu0 %v2990_v4  ;;  %2841 = vmatpush3.msra.mxu1 %v2373_v6 }
 0x831   :  { %2852 = vmatpush3.msra.mxu0 %v2369_v37  ;;  %2842 = vmatprep.subr.mxu1 %v2990_v4 }
 0x832   :  { %2853 = vmatprep.subr.mxu0 %v2990_v4  ;;  %2843 = vmatpush3.msra.mxu1 %v2372_v33 }
 0x833   :  { %2854 = vmatpush3.msra.mxu0 %v2368_v7  ;;  %2844 = vmatprep.subr.mxu1 %v2990_v4 }
 0x834   :  { %2855 = vmatprep.subr.mxu0 %v2990_v4  ;;  %2846 = vmatprep.mubr.msk.f32.mxu1 %vm3708_vm7, %v2990_v4 }
 0x835   :  { %2857 = vmatprep.mubr.msk.f32.mxu0 %vm3708_vm7, %v2990_v4  ;;  %2856 = vmatpush3.msra.mxu0 %v2367_v23 }
 0x836   :  { %2845 = vmatpush3.msra.mxu1 %v2371_v28 }
 0x8ec   :  { %v2289_v0 = vpop.f32.mrf.mxu1 }
 0x8ed   :  { %2858 = vmatmul.mubr.msk.f32.vlgmr.msra.gmra.mxu0 %vm3713_vm12, %v2289_v0 }
 0x8ee   :  { %v2363_v8 = vpop.f32.mrf.mxu0  ;;  %v2832_v49 = vpop.f32.mrf.mxu1 }
 0x8ef   :  { %2847 = vmatmul.mubr.msk.f32.vlgmr.msra.gmra.mxu1 %vm3714_vm5, %v2363_v8 }
 0x8f0   :  { %v2837_v58 = vpop.f32.mrf.mxu0 }
 0x9ad   :  { %v2517_v26 = vpop.f32.mrf.mxu0 }
 0x9af   :  { %v2444_v4 = vpop.f32.mrf.mxu1  ;;  %v2859_v11 = vpop.f32.mrf.mxu0 }
 0x9b0   :  { %v2518_v18 = vadd.f32 %v2517_v26, %v2444_v4 }
 0x9b1   :  { %v2848_v48 = vpop.f32.mrf.mxu1 }
 0x9b2   :  { %v2528_v50 = vadd.f32 %v2641_v43, %v2518_v18 }
 0x9b4   :  { %2530 = vst.msk [vmem:[#allocation3] sm:$0x3] %vm2529_vm6, %v2528_v50 }
 0x9b5   :  { %2979 = shalt.err (!%p2976_p4)
}
 0x9b6   :  { %2540 = dma.vmem_to_hbm [thread:$0]  %s2538_s16, 32, %s3690_s11, [#allocation4]  }
 0x9b7   :  { %2988 = dma.done.wait [#allocation4], 32  }
 0x9b8   :  { %2989 = vsyncadd [#allocation4], 4294967264 }
 0x9b9   :  { %2544 = vsyncpa [#allocation4], 1 }

</bundles_post_ra>
